<compile_context>
chip_gen: v7x
topology: tpu7x:2x2x1
jax: 0.10.0
libtpu: 0.0.40
codegen_flags: <defaults>
</compile_context>

<pallas_src>
import math
import numpy as np

import jax
import jax.numpy as jnp
from jax.experimental import pallas as pl
from jax.experimental.pallas import tpu as pltpu

# ----------------------------- configuration (small, consistent) -----------------------------
BS = 2                # batch
NVARS = 4             # c_in
SEQ_LEN = 128         # input length l
PATCH_LEN = 16        # patch_len (stride == patch_len in the module)
NUM_PATCH = SEQ_LEN // PATCH_LEN                    # 8
D_MODEL = 32
TARGET_DIM = 32
TARGET_PATCH_LEN = 48                               # fixed inside the module
OUT_PATCH_NUM = math.ceil(TARGET_DIM / PATCH_LEN)   # 2

P1 = NUM_PATCH // 2                                 # patches at conv-stride-2 scale
P2 = NUM_PATCH // 4                                 # patches at conv-stride-4 scale
N_ROWS = NUM_PATCH + P1 + P2                        # rows of packed per-(b,var) patch slab
OUT_W = OUT_PATCH_NUM * PATCH_LEN                   # flattened predicted length (32)


# ----------------------------- Pallas kernels -----------------------------
def _conv_kernel(xeo_ref, x4_ref, cw_ref, y1_ref, y2_ref):
    """scale_conv1 / scale_conv2: Conv1d(1,1,k,stride=k) on the VPU.

    xeo_ref : [2, bs*nvars, l//2]  even/odd column slices of the raw-reshaped input rows
    x4_ref  : [4, bs*nvars, l//4]  the 4 phase slices for the stride-4 conv
    cw_ref  : [1, 8]               [w1_0, w1_1, b1, w2_0, w2_1, w2_2, w2_3, b2]
    """
    c = cw_ref[...]
    y1_ref[...] = xeo_ref[0] * c[0:1, 0:1] + xeo_ref[1] * c[0:1, 1:2] + c[0:1, 2:3]
    y2_ref[...] = (x4_ref[0] * c[0:1, 3:4] + x4_ref[1] * c[0:1, 4:5]
                   + x4_ref[2] * c[0:1, 5:6] + x4_ref[3] * c[0:1, 6:7] + c[0:1, 7:8])


def _timeseek_fused_kernel(data_ref, emb_ref, enc_ref, head_ref, s2t_ref, s1t_ref, out_ref):
    """Fused multi-scale encoder + decoder_predict + decoder_PredictHead for one batch element.

    data_ref : [1, NVARS, N_ROWS, PATCH_LEN] packed patches (scale0 | scale1 | scale2)
    emb_ref  : [PATCH_LEN+1, D_MODEL]  rows 0..15 = interp_up @ W_emb,  row 16 = emb bias
    enc_ref  : [NUM_PATCH+5, D_MODEL]  rows 0..7 = pos[1:9], rows 8..11 = gate weights,
                                       row 12 col0/col1 = gate biases
    head_ref : [D_MODEL+1, OUT_W]      rows 0..31 = folded decoder_linear+weights+head+resize,
                                       row 32 = folded bias row
    s2t_ref  : [P1, P2]                bilinear patch interp matrix^T (2 -> 4)
    s1t_ref  : [NUM_PATCH, P1]         bilinear patch interp matrix^T (4 -> 8)
    """
    emb = emb_ref[...]
    A = emb[0:PATCH_LEN]                      # folded resize(16->48) @ embedding(48->D)
    eb = emb[PATCH_LEN:PATCH_LEN + 1]         # embedding bias

    enc = enc_ref[...]
    pos = enc[0:NUM_PATCH]                    # pos[1 : 1+num_patch]  (non-cls rows)
    g1x = enc[NUM_PATCH + 0:NUM_PATCH + 1]    # GateLayer1 weight acting on x (=interp scale-2)
    g1y = enc[NUM_PATCH + 1:NUM_PATCH + 2]    # GateLayer1 weight acting on y (=embedded scale-1)
    g2x = enc[NUM_PATCH + 2:NUM_PATCH + 3]
    g2y = enc[NUM_PATCH + 3:NUM_PATCH + 4]
    g1b = enc[NUM_PATCH + 4:NUM_PATCH + 5, 0:1]
    g2b = enc[NUM_PATCH + 4:NUM_PATCH + 5, 1:2]

    hd = head_ref[...]
    g_fold = hd[0:D_MODEL]
    c_fold = hd[D_MODEL:D_MODEL + 1]

    s2t = s2t_ref[...]
    s1t = s1t_ref[...]

    rows = []
    for v in range(NVARS):                    # unrolled; every variable is independent
        d = data_ref[0, v]                    # [N_ROWS, PATCH_LEN]
        zp = d[0:NUM_PATCH]                   # scale-0 patches
        z1p = d[NUM_PATCH:NUM_PATCH + P1]     # scale-1 patches
        z2p = d[NUM_PATCH + P1:N_ROWS]        # scale-2 patches

        # resize(patch 16->48) + Linear(48->d_model), folded into one matmul per scale
        e0 = jnp.dot(zp, A, preferred_element_type=jnp.float32) + eb      # [8, 32]
        e1 = jnp.dot(z1p, A, preferred_element_type=jnp.float32) + eb     # [4, 32]
        e2 = jnp.dot(z2p, A, preferred_element_type=jnp.float32) + eb     # [2, 32]

        # ---------------- scale 2 ----------------
        h2 = e2 + pos[0:P2]
        # TODO(synk): MOE_layers (encoder_layer_scale2) definition not provided -> identity.
        z2i = jnp.dot(s2t, h2, preferred_element_type=jnp.float32)        # bilinear P: 2 -> 4

        # ---------------- scale 1 ----------------
        gate1 = jax.nn.sigmoid(                                           # VPU row-reduce, no MXU
            jnp.sum(z2i * g1x + e1 * g1y, axis=-1, keepdims=True) + g1b)
        z1g = gate1 * z2i + e1
        m2 = jnp.mean(z1g, axis=0, keepdims=True)                         # torch.mean(z1, dim=2)
        h1 = (z1g - m2) + pos[0:P1]
        # TODO(synk): MOE_layers (encoder_layer_scale1) definition not provided -> identity.
        h1 = h1 + m2                                                      # z1[:, :, 1:, :] += mean2
        z1i = jnp.dot(s1t, h1, preferred_element_type=jnp.float32)        # bilinear P: 4 -> 8

        # ---------------- scale 0 ----------------
        gate2 = jax.nn.sigmoid(
            jnp.sum(z1i * g2x + e0 * g2y, axis=-1, keepdims=True) + g2b)
        z0g = gate2 * z1i + e0
        m1 = jnp.mean(z0g, axis=0, keepdims=True)
        h0 = (z0g - m1) + pos[0:NUM_PATCH]
        # TODO(synk): MOE_layers (encoder_layer_scale0) definition not provided -> identity.
        h0 = h0 + m1                                                      # z[:, :, 1:, :] += mean1

        # ---------------- decoder_predict + head ----------------
        # TODO(synk): Decoder (cross-attention decoder stack) definition not provided ->
        # identity on dec_in; decoder_linear, linspace weights, head Linear(32->48) and
        # resize(48->16) are exact linear maps folded into g_fold / c_fold.
        last = h0[NUM_PATCH - 1:NUM_PATCH]                                # z[:, :, -1, :]
        rows.append(jnp.dot(last, g_fold, preferred_element_type=jnp.float32) + c_fold)

    out_ref[0] = jnp.concatenate(rows, axis=0)                            # [NVARS, OUT_W]


# ----------------------------- host-side helpers -----------------------------
def linear_interp_matrix(in_len, out_len):
    """Exact matrix form of F.interpolate(mode='linear'/'bilinear', align_corners=False,
    antialias=False) along one axis: out = x @ M, with M:[in_len, out_len]."""
    m = np.zeros((in_len, out_len), np.float32)
    scale = in_len / out_len
    for j in range(out_len):
        src = (j + 0.5) * scale - 0.5
        src = max(src, 0.0)
        i0 = min(int(np.floor(src)), in_len - 1)
        i1 = min(i0 + 1, in_len - 1)
        frac = src - i0
        m[i0, j] += 1.0 - frac
        m[i1, j] += frac
    return m


def sincos_pos(q_len, d_model):
    # TODO(synk): positional_encoding() helper is not part of the provided source; using the
    # standard PatchTST 'sincos' table (deterministic) as the parameter value.
    pe = np.zeros((q_len, d_model), np.float32)
    position = np.arange(q_len)[:, None].astype(np.float32)
    div = np.exp(np.arange(0, d_model, 2).astype(np.float32) * -(math.log(10000.0) / d_model))
    pe[:, 0::2] = np.sin(position * div)
    pe[:, 1::2] = np.cos(position * div)
    pe = pe - pe.mean()
    pe = pe / (pe.std() * 10)
    return jnp.asarray(pe)


# ----------------------------- TimeSeek forward -----------------------------
def timeseek_forward(z, p):
    """z: [bs, seq_len, n_vars]  ->  [bs, target_dim, n_vars]  (head_type='prediction')."""
    bs, l, nv = z.shape
    assert l == SEQ_LEN and nv == NVARS
    z = z.astype(jnp.float32)

    # -------- kernel 1: multi-scale Conv1d(1,1,k,stride=k) downsampling (VPU) --------
    # torch: z.reshape(bs*nvars, 1, l) -> conv -> .reshape(bs, -1, nvars)  (raw reshapes,
    # exactly mirrored here on the same row-major layout).
    z_r = jnp.reshape(z, (bs * nv, l))
    xeo = jnp.stack([z_r[:, 0::2], z_r[:, 1::2]], axis=0)                    # [2, bs*nv, l//2]
    x4 = jnp.stack([z_r[:, j::4] for j in range(4)], axis=0)                 # [4, bs*nv, l//4]
    cw = jnp.concatenate([p["conv1_w"], p["conv1_b"],
                          p["conv2_w"], p["conv2_b"]]).reshape(1, 8).astype(jnp.float32)

    y1, y2 = pl.pallas_call(
        _conv_kernel,
        out_shape=(jax.ShapeDtypeStruct((bs * nv, l // 2), jnp.float32),
                   jax.ShapeDtypeStruct((bs * nv, l // 4), jnp.float32)),
        grid=(1,),
        in_specs=[pl.BlockSpec((2, bs * nv, l // 2), lambda i: (0, 0, 0)),
                  pl.BlockSpec((4, bs * nv, l // 4), lambda i: (0, 0, 0)),
                  pl.BlockSpec((1, 8), lambda i: (0, 0))],
        out_specs=(pl.BlockSpec((bs * nv, l // 2), lambda i: (0, 0)),
                   pl.BlockSpec((bs * nv, l // 4), lambda i: (0, 0))),
        compiler_params=pltpu.CompilerParams(dimension_semantics=("arbitrary",)),
    )(xeo, x4, cw)

    # -------- tiny host-side layout glue (pure reshape/transpose) --------
    # conv output .reshape(bs, -1, nvars) (raw) + create_patch (unfold, stride == patch_len),
    # reordered into per-(batch, var) patch slabs so the fused kernel is independent per step.
    def to_patch_slab(rows, n_p):
        x = jnp.reshape(rows, (bs, n_p, PATCH_LEN, nv))
        return jnp.transpose(x, (0, 3, 1, 2))                                # [bs, nv, n_p, patch]

    data = jnp.concatenate([to_patch_slab(z_r, NUM_PATCH),
                            to_patch_slab(y1, P1),
                            to_patch_slab(y2, P2)], axis=2)                  # [bs, nv, 14, 16]

    # -------- exact algebraic folds of the linear chains --------
    A = p["interp_up"] @ p["emb_w"]                                 # resize(16->48) @ Linear(48->D)
    emb_pack = jnp.concatenate([A, p["emb_b"].reshape(1, D_MODEL)], axis=0)       # [17, 32]

    pos_nc = p["pos"][1:1 + NUM_PATCH]                              # pos rows for non-cls patches
    gw = jnp.stack([p["gate1_w"][:D_MODEL], p["gate1_w"][D_MODEL:],
                    p["gate2_w"][:D_MODEL], p["gate2_w"][D_MODEL:]], axis=0)      # [4, 32]
    misc = jnp.zeros((1, D_MODEL), jnp.float32)
    misc = misc.at[0, 0].set(p["gate1_b"]).at[0, 1].set(p["gate2_b"])
    enc_pack = jnp.concatenate([pos_nc, gw, misc], axis=0)          # [13, 32]

    # decoder_linear -> *linspace weights -> Decoder(TODO identity) -> head Linear(32->48)
    # -> resize(48->16) : folded into one [D_MODEL, OUT_W] matrix plus one bias row.
    H = p["head_w"] @ p["interp_down"]                              # [32, 16]
    G = p["dec_lin_w"] @ H                                          # [32, 16]
    gb = p["dec_lin_b"] @ H                                         # [16]
    hb = p["head_b"] @ p["interp_down"]                             # [16]
    w_op = jnp.linspace(1.0, 0.5, OUT_PATCH_NUM)                    # get_dynamic_weights
    g_fold = jnp.concatenate([w_op[i] * G for i in range(OUT_PATCH_NUM)], axis=1)  # [32, 32]
    c_fold = jnp.concatenate([w_op[i] * gb + hb for i in range(OUT_PATCH_NUM)]).reshape(1, OUT_W)
    head_pack = jnp.concatenate([g_fold, c_fold], axis=0)           # [33, 32]

    s2t = p["bilin_s2"].T                                           # [P1, P2]  patch interp 2 -> 4
    s1t = p["bilin_s1"].T                                           # [NUM_PATCH, P1]       4 -> 8

    # -------- kernel 2: fused multi-scale encoder + decoder_predict + head --------
    out = pl.pallas_call(
        _timeseek_fused_kernel,
        out_shape=jax.ShapeDtypeStruct((bs, nv, OUT_W), jnp.float32),
        grid=(bs,),
        in_specs=[
            pl.BlockSpec((1, nv, N_ROWS, PATCH_LEN), lambda b: (b, 0, 0, 0)),
            pl.BlockSpec((PATCH_LEN + 1, D_MODEL), lambda b: (0, 0)),
            pl.BlockSpec((NUM_PATCH + 5, D_MODEL), lambda b: (0, 0)),
            pl.BlockSpec((D_MODEL + 1, OUT_W), lambda b: (0, 0)),
            pl.BlockSpec((P1, P2), lambda b: (0, 0)),
            pl.BlockSpec((NUM_PATCH, P1), lambda b: (0, 0)),
        ],
        out_specs=pl.BlockSpec((1, nv, OUT_W), lambda b: (b, 0, 0)),
        compiler_params=pltpu.CompilerParams(dimension_semantics=("parallel",)),
    )(data, emb_pack, enc_pack, head_pack, s2t, s1t)

    # decoder_PredictHead: permute(0, 2, 3, 1) + reshape + target_dim crop
    out = jnp.reshape(out, (bs, nv, OUT_PATCH_NUM, PATCH_LEN))
    out = jnp.transpose(out, (0, 2, 3, 1)).reshape(bs, OUT_W, nv)
    return out[:, :TARGET_DIM, :]


# ----------------------------- deterministic parameter init -----------------------------
def init_params():
    key = jax.random.PRNGKey(0)
    ks = jax.random.split(key, 16)

    def nrm(k, shape, std=0.02):
        return (std * jax.random.normal(k, shape)).astype(jnp.float32)

    return {
        # Conv1d(1, 1, k, stride=k)
        "conv1_w": nrm(ks[0], (2,), 0.5),
        "conv1_b": nrm(ks[1], (1,), 0.1),
        "conv2_w": nrm(ks[2], (4,), 0.5),
        "conv2_b": nrm(ks[3], (1,), 0.1),
        # nn.Linear(target_patch_len, d_model), stored input-major ([in, out])
        "emb_w": nrm(ks[4], (TARGET_PATCH_LEN, D_MODEL)),
        "emb_b": jnp.zeros((D_MODEL,), jnp.float32),
        # cls_embedding only feeds the missing MOE encoders / decoder cross-attention
        # (identity TODOs) -> kept for fidelity, unused by the computable output.
        "cls": nrm(ks[5], (D_MODEL,), 1.0),
        "pos": sincos_pos(1 + NUM_PATCH + OUT_PATCH_NUM, D_MODEL),
        # GateLayer_new: nn.Linear(2*d_model, 1)
        "gate1_w": nrm(ks[6], (2 * D_MODEL,), 0.1),
        "gate1_b": jnp.zeros((), jnp.float32),
        "gate2_w": nrm(ks[7], (2 * D_MODEL,), 0.1),
        "gate2_b": jnp.zeros((), jnp.float32),
        # decoder_linear and decoder_PredictHead.linear (input-major)
        "dec_lin_w": nrm(ks[8], (D_MODEL, D_MODEL)),
        "dec_lin_b": jnp.zeros((D_MODEL,), jnp.float32),
        "head_w": nrm(ks[9], (D_MODEL, TARGET_PATCH_LEN)),
        "head_b": jnp.zeros((TARGET_PATCH_LEN,), jnp.float32),
        # fixed (non-learned) exact interpolation matrices
        "interp_up": jnp.asarray(linear_interp_matrix(PATCH_LEN, TARGET_PATCH_LEN)),
        "interp_down": jnp.asarray(linear_interp_matrix(TARGET_PATCH_LEN, PATCH_LEN)),
        "bilin_s2": jnp.asarray(linear_interp_matrix(P2, P1)),
        "bilin_s1": jnp.asarray(linear_interp_matrix(P1, NUM_PATCH)),
    }


if __name__ == "__main__":
    params = init_params()
    z = jax.random.normal(jax.random.PRNGKey(0), (BS, SEQ_LEN, NVARS), dtype=jnp.float32)

    fwd = jax.jit(timeseek_forward)
    out = jax.block_until_ready(fwd(z, params))

    assert out.shape == (BS, TARGET_DIM, NVARS), out.shape
    assert bool(jnp.all(jnp.isfinite(out)))
    print("KERNEL_OK")
</pallas_src>

<mosaic_0001>
module attributes {stable_mosaic.version = 11 : i64} {
  func.func @_conv_kernel(%arg0: i32, %arg1: memref<2x8x64xf32, #tpu.memory_space<vmem>>, %arg2: memref<4x8x32xf32, #tpu.memory_space<vmem>>, %arg3: memref<1x8xf32, #tpu.memory_space<vmem>>, %arg4: memref<8x64xf32, #tpu.memory_space<vmem>>, %arg5: memref<8x32xf32, #tpu.memory_space<vmem>>) attributes {dimension_semantics = [#tpu.dimension_semantics<arbitrary>], iteration_bounds = array<i64: 1>, scalar_prefetch = 0 : i64, scratch_operands = 0 : i64, tpu.core_type = #tpu.core_type<tc>, window_params = [{pipeline_mode = #tpu.pipeline_mode<synchronous>, transform_indices = @transform_0, window_bounds = array<i64: 2, 8, 64>}, {pipeline_mode = #tpu.pipeline_mode<synchronous>, transform_indices = @transform_1, window_bounds = array<i64: 4, 8, 32>}, {pipeline_mode = #tpu.pipeline_mode<synchronous>, transform_indices = @transform_2, window_bounds = array<i64: 1, 8>}, {pipeline_mode = #tpu.pipeline_mode<synchronous>, transform_indices = @transform_3, window_bounds = array<i64: 8, 64>}, {pipeline_mode = #tpu.pipeline_mode<synchronous>, transform_indices = @transform_4, window_bounds = array<i64: 8, 32>}]} {
    %c0 = arith.constant 0 : index
    %c0_0 = arith.constant 0 : index
    %0 = vector.load %arg3[%c0, %c0_0] : memref<1x8xf32, #tpu.memory_space<vmem>>, vector<1x8xf32>
    %c0_1 = arith.constant 0 : index
    %c0_2 = arith.constant 0 : index
    %c0_3 = arith.constant 0 : index
    %1 = vector.load %arg1[%c0_1, %c0_2, %c0_3] : memref<2x8x64xf32, #tpu.memory_space<vmem>>, vector<1x8x64xf32>
    %2 = vector.shape_cast %1 : vector<1x8x64xf32> to vector<8x64xf32>
    %3 = vector.extract_strided_slice %0 {offsets = [0, 0], sizes = [1, 1], strides = [1, 1]} : vector<1x8xf32> to vector<1x1xf32>
    %4 = vector.broadcast %3 : vector<1x1xf32> to vector<8x64xf32>
    %5 = arith.mulf %2, %4 : vector<8x64xf32>
    %c1 = arith.constant 1 : index
    %c0_4 = arith.constant 0 : index
    %c0_5 = arith.constant 0 : index
    %6 = vector.load %arg1[%c1, %c0_4, %c0_5] : memref<2x8x64xf32, #tpu.memory_space<vmem>>, vector<1x8x64xf32>
    %7 = vector.shape_cast %6 : vector<1x8x64xf32> to vector<8x64xf32>
    %8 = vector.extract_strided_slice %0 {offsets = [0, 1], sizes = [1, 1], strides = [1, 1]} : vector<1x8xf32> to vector<1x1xf32>
    %9 = vector.broadcast %8 : vector<1x1xf32> to vector<8x64xf32>
    %10 = arith.mulf %7, %9 : vector<8x64xf32>
    %11 = arith.addf %5, %10 : vector<8x64xf32>
    %12 = vector.extract_strided_slice %0 {offsets = [0, 2], sizes = [1, 1], strides = [1, 1]} : vector<1x8xf32> to vector<1x1xf32>
    %13 = vector.broadcast %12 : vector<1x1xf32> to vector<8x64xf32>
    %14 = arith.addf %11, %13 : vector<8x64xf32>
    %c0_6 = arith.constant 0 : index
    %c0_7 = arith.constant 0 : index
    %15 = vector.load %arg4[%c0_6, %c0_7] : memref<8x64xf32, #tpu.memory_space<vmem>>, vector<8x64xf32>
    tpu.vector_store %arg4[%c0_6, %c0_7], %14 {strides = array<i32>} : memref<8x64xf32, #tpu.memory_space<vmem>>, vector<8x64xf32>,
    %c0_8 = arith.constant 0 : index
    %c0_9 = arith.constant 0 : index
    %c0_10 = arith.constant 0 : index
    %16 = vector.load %arg2[%c0_8, %c0_9, %c0_10] : memref<4x8x32xf32, #tpu.memory_space<vmem>>, vector<1x8x32xf32>
    %17 = vector.shape_cast %16 : vector<1x8x32xf32> to vector<8x32xf32>
    %18 = vector.extract_strided_slice %0 {offsets = [0, 3], sizes = [1, 1], strides = [1, 1]} : vector<1x8xf32> to vector<1x1xf32>
    %19 = vector.broadcast %18 : vector<1x1xf32> to vector<8x32xf32>
    %20 = arith.mulf %17, %19 : vector<8x32xf32>
    %c1_11 = arith.constant 1 : index
    %c0_12 = arith.constant 0 : index
    %c0_13 = arith.constant 0 : index
    %21 = vector.load %arg2[%c1_11, %c0_12, %c0_13] : memref<4x8x32xf32, #tpu.memory_space<vmem>>, vector<1x8x32xf32>
    %22 = vector.shape_cast %21 : vector<1x8x32xf32> to vector<8x32xf32>
    %23 = vector.extract_strided_slice %0 {offsets = [0, 4], sizes = [1, 1], strides = [1, 1]} : vector<1x8xf32> to vector<1x1xf32>
    %24 = vector.broadcast %23 : vector<1x1xf32> to vector<8x32xf32>
    %25 = arith.mulf %22, %24 : vector<8x32xf32>
    %26 = arith.addf %20, %25 : vector<8x32xf32>
    %c2 = arith.constant 2 : index
    %c0_14 = arith.constant 0 : index
    %c0_15 = arith.constant 0 : index
    %27 = vector.load %arg2[%c2, %c0_14, %c0_15] : memref<4x8x32xf32, #tpu.memory_space<vmem>>, vector<1x8x32xf32>
    %28 = vector.shape_cast %27 : vector<1x8x32xf32> to vector<8x32xf32>
    %29 = vector.extract_strided_slice %0 {offsets = [0, 5], sizes = [1, 1], strides = [1, 1]} : vector<1x8xf32> to vector<1x1xf32>
    %30 = vector.broadcast %29 : vector<1x1xf32> to vector<8x32xf32>
    %31 = arith.mulf %28, %30 : vector<8x32xf32>
    %32 = arith.addf %26, %31 : vector<8x32xf32>
    %c3 = arith.constant 3 : index
    %c0_16 = arith.constant 0 : index
    %c0_17 = arith.constant 0 : index
    %33 = vector.load %arg2[%c3, %c0_16, %c0_17] : memref<4x8x32xf32, #tpu.memory_space<vmem>>, vector<1x8x32xf32>
    %34 = vector.shape_cast %33 : vector<1x8x32xf32> to vector<8x32xf32>
    %35 = vector.extract_strided_slice %0 {offsets = [0, 6], sizes = [1, 1], strides = [1, 1]} : vector<1x8xf32> to vector<1x1xf32>
    %36 = vector.broadcast %35 : vector<1x1xf32> to vector<8x32xf32>
    %37 = arith.mulf %34, %36 : vector<8x32xf32>
    %38 = arith.addf %32, %37 : vector<8x32xf32>
    %39 = vector.extract_strided_slice %0 {offsets = [0, 7], sizes = [1, 1], strides = [1, 1]} : vector<1x8xf32> to vector<1x1xf32>
    %40 = vector.broadcast %39 : vector<1x1xf32> to vector<8x32xf32>
    %41 = arith.addf %38, %40 : vector<8x32xf32>
    %c0_18 = arith.constant 0 : index
    %c0_19 = arith.constant 0 : index
    %42 = vector.load %arg5[%c0_18, %c0_19] : memref<8x32xf32, #tpu.memory_space<vmem>>, vector<8x32xf32>
    tpu.vector_store %arg5[%c0_18, %c0_19], %41 {strides = array<i32>} : memref<8x32xf32, #tpu.memory_space<vmem>>, vector<8x32xf32>,
    return
  }
  func.func @transform_0(%arg0: i32) -> (i32, i32, i32) {
    %c0_i32 = arith.constant 0 : i32
    %c0_i32_0 = arith.constant 0 : i32
    %c0_i32_1 = arith.constant 0 : i32
    %c0_i32_2 = arith.constant 0 : i32
    return %c0_i32, %c0_i32_0, %c0_i32_1 : i32, i32, i32
  }
  func.func @transform_1(%arg0: i32) -> (i32, i32, i32) {
    %c0_i32 = arith.constant 0 : i32
    %c0_i32_0 = arith.constant 0 : i32
    %c0_i32_1 = arith.constant 0 : i32
    %c0_i32_2 = arith.constant 0 : i32
    return %c0_i32, %c0_i32_0, %c0_i32_1 : i32, i32, i32
  }
  func.func @transform_2(%arg0: i32) -> (i32, i32) {
    %c0_i32 = arith.constant 0 : i32
    %c0_i32_0 = arith.constant 0 : i32
    %c0_i32_1 = arith.constant 0 : i32
    return %c0_i32, %c0_i32_0 : i32, i32
  }
  func.func @transform_3(%arg0: i32) -> (i32, i32) {
    %c0_i32 = arith.constant 0 : i32
    %c0_i32_0 = arith.constant 0 : i32
    %c0_i32_1 = arith.constant 0 : i32
    return %c0_i32, %c0_i32_0 : i32, i32
  }
  func.func @transform_4(%arg0: i32) -> (i32, i32) {
    %c0_i32 = arith.constant 0 : i32
    %c0_i32_0 = arith.constant 0 : i32
    %c0_i32_1 = arith.constant 0 : i32
    return %c0_i32, %c0_i32_0 : i32, i32
  }
}

module attributes {stable_mosaic.version = 11 : i64} {
  func.func @_timeseek_fused_kernel(%arg0: i32, %arg1: memref<1x4x14x16xf32, #tpu.memory_space<vmem>>, %arg2: memref<17x32xf32, #tpu.memory_space<vmem>>, %arg3: memref<13x32xf32, #tpu.memory_space<vmem>>, %arg4: memref<33x32xf32, #tpu.memory_space<vmem>>, %arg5: memref<4x2xf32, #tpu.memory_space<vmem>>, %arg6: memref<8x4xf32, #tpu.memory_space<vmem>>, %arg7: memref<1x4x32xf32, #tpu.memory_space<vmem>>) attributes {dimension_semantics = [#tpu.dimension_semantics<parallel>], iteration_bounds = array<i64: 2>, scalar_prefetch = 0 : i64, scratch_operands = 0 : i64, tpu.core_type = #tpu.core_type<tc>, window_params = [{transform_indices = @transform_0, window_bounds = array<i64: 1, 4, 14, 16>}, {pipeline_mode = #tpu.pipeline_mode<synchronous>, transform_indices = @transform_1, window_bounds = array<i64: 17, 32>}, {pipeline_mode = #tpu.pipeline_mode<synchronous>, transform_indices = @transform_2, window_bounds = array<i64: 13, 32>}, {pipeline_mode = #tpu.pipeline_mode<synchronous>, transform_indices = @transform_3, window_bounds = array<i64: 33, 32>}, {pipeline_mode = #tpu.pipeline_mode<synchronous>, transform_indices = @transform_4, window_bounds = array<i64: 4, 2>}, {pipeline_mode = #tpu.pipeline_mode<synchronous>, transform_indices = @transform_5, window_bounds = array<i64: 8, 4>}, {transform_indices = @transform_6, window_bounds = array<i64: 1, 4, 32>}]} {
    %c0 = arith.constant 0 : index
    %c0_0 = arith.constant 0 : index
    %0 = vector.load %arg2[%c0, %c0_0] : memref<17x32xf32, #tpu.memory_space<vmem>>, vector<17x32xf32>
    %1 = vector.extract_strided_slice %0 {offsets = [0, 0], sizes = [16, 32], strides = [1, 1]} : vector<17x32xf32> to vector<16x32xf32>
    %2 = vector.extract_strided_slice %0 {offsets = [16, 0], sizes = [1, 32], strides = [1, 1]} : vector<17x32xf32> to vector<1x32xf32>
    %c0_1 = arith.constant 0 : index
    %c0_2 = arith.constant 0 : index
    %3 = vector.load %arg3[%c0_1, %c0_2] : memref<13x32xf32, #tpu.memory_space<vmem>>, vector<13x32xf32>
    %4 = vector.extract_strided_slice %3 {offsets = [0, 0], sizes = [8, 32], strides = [1, 1]} : vector<13x32xf32> to vector<8x32xf32>
    %5 = vector.extract_strided_slice %3 {offsets = [8, 0], sizes = [1, 32], strides = [1, 1]} : vector<13x32xf32> to vector<1x32xf32>
    %6 = vector.extract_strided_slice %3 {offsets = [9, 0], sizes = [1, 32], strides = [1, 1]} : vector<13x32xf32> to vector<1x32xf32>
    %7 = vector.extract_strided_slice %3 {offsets = [10, 0], sizes = [1, 32], strides = [1, 1]} : vector<13x32xf32> to vector<1x32xf32>
    %8 = vector.extract_strided_slice %3 {offsets = [11, 0], sizes = [1, 32], strides = [1, 1]} : vector<13x32xf32> to vector<1x32xf32>
    %9 = vector.extract_strided_slice %3 {offsets = [12, 0], sizes = [1, 1], strides = [1, 1]} : vector<13x32xf32> to vector<1x1xf32>
    %10 = vector.extract_strided_slice %3 {offsets = [12, 1], sizes = [1, 1], strides = [1, 1]} : vector<13x32xf32> to vector<1x1xf32>
    %c0_3 = arith.constant 0 : index
    %c0_4 = arith.constant 0 : index
    %11 = vector.load %arg4[%c0_3, %c0_4] : memref<33x32xf32, #tpu.memory_space<vmem>>, vector<33x32xf32>
    %12 = vector.extract_strided_slice %11 {offsets = [0, 0], sizes = [32, 32], strides = [1, 1]} : vector<33x32xf32> to vector<32x32xf32>
    %13 = vector.extract_strided_slice %11 {offsets = [32, 0], sizes = [1, 32], strides = [1, 1]} : vector<33x32xf32> to vector<1x32xf32>
    %c0_5 = arith.constant 0 : index
    %c0_6 = arith.constant 0 : index
    %14 = vector.load %arg5[%c0_5, %c0_6] : memref<4x2xf32, #tpu.memory_space<vmem>>, vector<4x2xf32>
    %c0_7 = arith.constant 0 : index
    %c0_8 = arith.constant 0 : index
    %15 = vector.load %arg6[%c0_7, %c0_8] : memref<8x4xf32, #tpu.memory_space<vmem>>, vector<8x4xf32>
    %c0_9 = arith.constant 0 : index
    %c0_10 = arith.constant 0 : index
    %c0_11 = arith.constant 0 : index
    %c0_12 = arith.constant 0 : index
    %16 = vector.load %arg1[%c0_9, %c0_10, %c0_11, %c0_12] : memref<1x4x14x16xf32, #tpu.memory_space<vmem>>, vector<1x1x14x16xf32>
    %17 = vector.shape_cast %16 : vector<1x1x14x16xf32> to vector<14x16xf32>
    %18 = vector.extract_strided_slice %17 {offsets = [0, 0], sizes = [8, 16], strides = [1, 1]} : vector<14x16xf32> to vector<8x16xf32>
    %19 = vector.extract_strided_slice %17 {offsets = [8, 0], sizes = [4, 16], strides = [1, 1]} : vector<14x16xf32> to vector<4x16xf32>
    %20 = vector.extract_strided_slice %17 {offsets = [12, 0], sizes = [2, 16], strides = [1, 1]} : vector<14x16xf32> to vector<2x16xf32>
    %cst = arith.constant dense<0.000000e+00> : vector<8x32xf32>
    %21 = tpu.matmul %18, %1, %cst {dimension_numbers = #tpu.dot_dimension_numbers<[1], [0], [0], [1], [0, 0, 1, 1], [], []>} : vector<8x16xf32>, vector<16x32xf32>, vector<8x32xf32> -> vector<8x32xf32>
    %22 = vector.broadcast %2 : vector<1x32xf32> to vector<8x32xf32>
    %23 = arith.addf %21, %22 : vector<8x32xf32>
    %cst_13 = arith.constant dense<0.000000e+00> : vector<4x32xf32>
    %24 = tpu.matmul %19, %1, %cst_13 {dimension_numbers = #tpu.dot_dimension_numbers<[1], [0], [0], [1], [0, 0, 1, 1], [], []>} : vector<4x16xf32>, vector<16x32xf32>, vector<4x32xf32> -> vector<4x32xf32>
    %25 = vector.broadcast %2 : vector<1x32xf32> to vector<4x32xf32>
    %26 = arith.addf %24, %25 : vector<4x32xf32>
    %cst_14 = arith.constant dense<0.000000e+00> : vector<2x32xf32>
    %27 = tpu.matmul %20, %1, %cst_14 {dimension_numbers = #tpu.dot_dimension_numbers<[1], [0], [0], [1], [0, 0, 1, 1], [], []>} : vector<2x16xf32>, vector<16x32xf32>, vector<2x32xf32> -> vector<2x32xf32>
    %28 = vector.broadcast %2 : vector<1x32xf32> to vector<2x32xf32>
    %29 = arith.addf %27, %28 : vector<2x32xf32>
    %30 = vector.extract_strided_slice %4 {offsets = [0, 0], sizes = [2, 32], strides = [1, 1]} : vector<8x32xf32> to vector<2x32xf32>
    %31 = arith.addf %29, %30 : vector<2x32xf32>
    %cst_15 = arith.constant dense<0.000000e+00> : vector<4x32xf32>
    %32 = tpu.matmul %14, %31, %cst_15 {dimension_numbers = #tpu.dot_dimension_numbers<[1], [0], [0], [1], [0, 0, 1, 1], [], []>} : vector<4x2xf32>, vector<2x32xf32>, vector<4x32xf32> -> vector<4x32xf32>
    %33 = vector.broadcast %5 : vector<1x32xf32> to vector<4x32xf32>
    %34 = arith.mulf %32, %33 : vector<4x32xf32>
    %35 = vector.broadcast %6 : vector<1x32xf32> to vector<4x32xf32>
    %36 = arith.mulf %26, %35 : vector<4x32xf32>
    %37 = arith.addf %34, %36 : vector<4x32xf32>
    %cst_16 = arith.constant dense<0.000000e+00> : vector<4xf32>
    %38 = vector.multi_reduction <add>, %37, %cst_16 [1] : vector<4x32xf32> to vector<4xf32>
    %39 = vector.shape_cast %38 : vector<4xf32> to vector<4x1xf32>
    %40 = vector.broadcast %9 : vector<1x1xf32> to vector<4x1xf32>
    %41 = arith.addf %39, %40 : vector<4x1xf32>
    %42 = arith.negf %41 : vector<4x1xf32>
    %43 = math.exp %42 : vector<4x1xf32>
    %cst_17 = arith.constant 1.000000e+00 : f32
    %44 = vector.broadcast %cst_17 : f32 to vector<4x1xf32>
    %45 = arith.addf %44, %43 : vector<4x1xf32>
    %46 = arith.divf %44, %45 : vector<4x1xf32>
    %47 = vector.broadcast %46 : vector<4x1xf32> to vector<4x32xf32>
    %48 = arith.mulf %47, %32 : vector<4x32xf32>
    %49 = arith.addf %48, %26 : vector<4x32xf32>
    %cst_18 = arith.constant dense<0.000000e+00> : vector<32xf32>
    %50 = vector.multi_reduction <add>, %49, %cst_18 [0] : vector<4x32xf32> to vector<32xf32>
    %51 = vector.shape_cast %50 : vector<32xf32> to vector<1x32xf32>
    %cst_19 = arith.constant 4.000000e+00 : f32
    %52 = vector.broadcast %cst_19 : f32 to vector<1x32xf32>
    %53 = arith.divf %51, %52 : vector<1x32xf32>
    %54 = vector.broadcast %53 : vector<1x32xf32> to vector<4x32xf32>
    %55 = arith.subf %49, %54 : vector<4x32xf32>
    %56 = vector.extract_strided_slice %4 {offsets = [0, 0], sizes = [4, 32], strides = [1, 1]} : vector<8x32xf32> to vector<4x32xf32>
    %57 = arith.addf %55, %56 : vector<4x32xf32>
    %58 = vector.broadcast %53 : vector<1x32xf32> to vector<4x32xf32>
    %59 = arith.addf %57, %58 : vector<4x32xf32>
    %cst_20 = arith.constant dense<0.000000e+00> : vector<8x32xf32>
    %60 = tpu.matmul %15, %59, %cst_20 {dimension_numbers = #tpu.dot_dimension_numbers<[1], [0], [0], [1], [0, 0, 1, 1], [], []>} : vector<8x4xf32>, vector<4x32xf32>, vector<8x32xf32> -> vector<8x32xf32>
    %61 = vector.broadcast %7 : vector<1x32xf32> to vector<8x32xf32>
    %62 = arith.mulf %60, %61 : vector<8x32xf32>
    %63 = vector.broadcast %8 : vector<1x32xf32> to vector<8x32xf32>
    %64 = arith.mulf %23, %63 : vector<8x32xf32>
    %65 = arith.addf %62, %64 : vector<8x32xf32>
    %cst_21 = arith.constant dense<0.000000e+00> : vector<8xf32>
    %66 = vector.multi_reduction <add>, %65, %cst_21 [1] : vector<8x32xf32> to vector<8xf32>
    %67 = vector.shape_cast %66 : vector<8xf32> to vector<8x1xf32>
    %68 = vector.broadcast %10 : vector<1x1xf32> to vector<8x1xf32>
    %69 = arith.addf %67, %68 : vector<8x1xf32>
    %70 = arith.negf %69 : vector<8x1xf32>
    %71 = math.exp %70 : vector<8x1xf32>
    %cst_22 = arith.constant 1.000000e+00 : f32
    %72 = vector.broadcast %cst_22 : f32 to vector<8x1xf32>
    %73 = arith.addf %72, %71 : vector<8x1xf32>
    %74 = arith.divf %72, %73 : vector<8x1xf32>
    %75 = vector.broadcast %74 : vector<8x1xf32> to vector<8x32xf32>
    %76 = arith.mulf %75, %60 : vector<8x32xf32>
    %77 = arith.addf %76, %23 : vector<8x32xf32>
    %cst_23 = arith.constant dense<0.000000e+00> : vector<32xf32>
    %78 = vector.multi_reduction <add>, %77, %cst_23 [0] : vector<8x32xf32> to vector<32xf32>
    %79 = vector.shape_cast %78 : vector<32xf32> to vector<1x32xf32>
    %cst_24 = arith.constant 8.000000e+00 : f32
    %80 = vector.broadcast %cst_24 : f32 to vector<1x32xf32>
    %81 = arith.divf %79, %80 : vector<1x32xf32>
    %82 = vector.broadcast %81 : vector<1x32xf32> to vector<8x32xf32>
    %83 = arith.subf %77, %82 : vector<8x32xf32>
    %84 = arith.addf %83, %4 : vector<8x32xf32>
    %85 = vector.broadcast %81 : vector<1x32xf32> to vector<8x32xf32>
    %86 = arith.addf %84, %85 : vector<8x32xf32>
    %87 = vector.extract_strided_slice %86 {offsets = [7, 0], sizes = [1, 32], strides = [1, 1]} : vector<8x32xf32> to vector<1x32xf32>
    %cst_25 = arith.constant dense<0.000000e+00> : vector<1x32xf32>
    %88 = tpu.matmul %87, %12, %cst_25 {dimension_numbers = #tpu.dot_dimension_numbers<[1], [0], [0], [1], [0, 0, 1, 1], [], []>} : vector<1x32xf32>, vector<32x32xf32>, vector<1x32xf32> -> vector<1x32xf32>
    %89 = arith.addf %88, %13 : vector<1x32xf32>
    %c0_26 = arith.constant 0 : index
    %c1 = arith.constant 1 : index
    %c0_27 = arith.constant 0 : index
    %c0_28 = arith.constant 0 : index
    %90 = vector.load %arg1[%c0_26, %c1, %c0_27, %c0_28] : memref<1x4x14x16xf32, #tpu.memory_space<vmem>>, vector<1x1x14x16xf32>
    %91 = vector.shape_cast %90 : vector<1x1x14x16xf32> to vector<14x16xf32>
    %92 = vector.extract_strided_slice %91 {offsets = [0, 0], sizes = [8, 16], strides = [1, 1]} : vector<14x16xf32> to vector<8x16xf32>
    %93 = vector.extract_strided_slice %91 {offsets = [8, 0], sizes = [4, 16], strides = [1, 1]} : vector<14x16xf32> to vector<4x16xf32>
    %94 = vector.extract_strided_slice %91 {offsets = [12, 0], sizes = [2, 16], strides = [1, 1]} : vector<14x16xf32> to vector<2x16xf32>
    %cst_29 = arith.constant dense<0.000000e+00> : vector<8x32xf32>
    %95 = tpu.matmul %92, %1, %cst_29 {dimension_numbers = #tpu.dot_dimension_numbers<[1], [0], [0], [1], [0, 0, 1, 1], [], []>} : vector<8x16xf32>, vector<16x32xf32>, vector<8x32xf32> -> vector<8x32xf32>
    %96 = vector.broadcast %2 : vector<1x32xf32> to vector<8x32xf32>
    %97 = arith.addf %95, %96 : vector<8x32xf32>
    %cst_30 = arith.constant dense<0.000000e+00> : vector<4x32xf32>
    %98 = tpu.matmul %93, %1, %cst_30 {dimension_numbers = #tpu.dot_dimension_numbers<[1], [0], [0], [1], [0, 0, 1, 1], [], []>} : vector<4x16xf32>, vector<16x32xf32>, vector<4x32xf32> -> vector<4x32xf32>
    %99 = vector.broadcast %2 : vector<1x32xf32> to vector<4x32xf32>
    %100 = arith.addf %98, %99 : vector<4x32xf32>
    %cst_31 = arith.constant dense<0.000000e+00> : vector<2x32xf32>
    %101 = tpu.matmul %94, %1, %cst_31 {dimension_numbers = #tpu.dot_dimension_numbers<[1], [0], [0], [1], [0, 0, 1, 1], [], []>} : vector<2x16xf32>, vector<16x32xf32>, vector<2x32xf32> -> vector<2x32xf32>
    %102 = vector.broadcast %2 : vector<1x32xf32> to vector<2x32xf32>
    %103 = arith.addf %101, %102 : vector<2x32xf32>
    %104 = vector.extract_strided_slice %4 {offsets = [0, 0], sizes = [2, 32], strides = [1, 1]} : vector<8x32xf32> to vector<2x32xf32>
    %105 = arith.addf %103, %104 : vector<2x32xf32>
    %cst_32 = arith.constant dense<0.000000e+00> : vector<4x32xf32>
    %106 = tpu.matmul %14, %105, %cst_32 {dimension_numbers = #tpu.dot_dimension_numbers<[1], [0], [0], [1], [0, 0, 1, 1], [], []>} : vector<4x2xf32>, vector<2x32xf32>, vector<4x32xf32> -> vector<4x32xf32>
    %107 = vector.broadcast %5 : vector<1x32xf32> to vector<4x32xf32>
    %108 = arith.mulf %106, %107 : vector<4x32xf32>
    %109 = vector.broadcast %6 : vector<1x32xf32> to vector<4x32xf32>
    %110 = arith.mulf %100, %109 : vector<4x32xf32>
    %111 = arith.addf %108, %110 : vector<4x32xf32>
    %cst_33 = arith.constant dense<0.000000e+00> : vector<4xf32>
    %112 = vector.multi_reduction <add>, %111, %cst_33 [1] : vector<4x32xf32> to vector<4xf32>
    %113 = vector.shape_cast %112 : vector<4xf32> to vector<4x1xf32>
    %114 = vector.broadcast %9 : vector<1x1xf32> to vector<4x1xf32>
    %115 = arith.addf %113, %114 : vector<4x1xf32>
    %116 = arith.negf %115 : vector<4x1xf32>
    %117 = math.exp %116 : vector<4x1xf32>
    %cst_34 = arith.constant 1.000000e+00 : f32
    %118 = vector.broadcast %cst_34 : f32 to vector<4x1xf32>
    %119 = arith.addf %118, %117 : vector<4x1xf32>
    %120 = arith.divf %118, %119 : vector<4x1xf32>
    %121 = vector.broadcast %120 : vector<4x1xf32> to vector<4x32xf32>
    %122 = arith.mulf %121, %106 : vector<4x32xf32>
    %123 = arith.addf %122, %100 : vector<4x32xf32>
    %cst_35 = arith.constant dense<0.000000e+00> : vector<32xf32>
    %124 = vector.multi_reduction <add>, %123, %cst_35 [0] : vector<4x32xf32> to vector<32xf32>
    %125 = vector.shape_cast %124 : vector<32xf32> to vector<1x32xf32>
    %cst_36 = arith.constant 4.000000e+00 : f32
    %126 = vector.broadcast %cst_36 : f32 to vector<1x32xf32>
    %127 = arith.divf %125, %126 : vector<1x32xf32>
    %128 = vector.broadcast %127 : vector<1x32xf32> to vector<4x32xf32>
    %129 = arith.subf %123, %128 : vector<4x32xf32>
    %130 = vector.extract_strided_slice %4 {offsets = [0, 0], sizes = [4, 32], strides = [1, 1]} : vector<8x32xf32> to vector<4x32xf32>
    %131 = arith.addf %129, %130 : vector<4x32xf32>
    %132 = vector.broadcast %127 : vector<1x32xf32> to vector<4x32xf32>
    %133 = arith.addf %131, %132 : vector<4x32xf32>
    %cst_37 = arith.constant dense<0.000000e+00> : vector<8x32xf32>
    %134 = tpu.matmul %15, %133, %cst_37 {dimension_numbers = #tpu.dot_dimension_numbers<[1], [0], [0], [1], [0, 0, 1, 1], [], []>} : vector<8x4xf32>, vector<4x32xf32>, vector<8x32xf32> -> vector<8x32xf32>
    %135 = vector.broadcast %7 : vector<1x32xf32> to vector<8x32xf32>
    %136 = arith.mulf %134, %135 : vector<8x32xf32>
    %137 = vector.broadcast %8 : vector<1x32xf32> to vector<8x32xf32>
    %138 = arith.mulf %97, %137 : vector<8x32xf32>
    %139 = arith.addf %136, %138 : vector<8x32xf32>
    %cst_38 = arith.constant dense<0.000000e+00> : vector<8xf32>
    %140 = vector.multi_reduction <add>, %139, %cst_38 [1] : vector<8x32xf32> to vector<8xf32>
    %141 = vector.shape_cast %140 : vector<8xf32> to vector<8x1xf32>
    %142 = vector.broadcast %10 : vector<1x1xf32> to vector<8x1xf32>
    %143 = arith.addf %141, %142 : vector<8x1xf32>
    %144 = arith.negf %143 : vector<8x1xf32>
    %145 = math.exp %144 : vector<8x1xf32>
    %cst_39 = arith.constant 1.000000e+00 : f32
    %146 = vector.broadcast %cst_39 : f32 to vector<8x1xf32>
    %147 = arith.addf %146, %145 : vector<8x1xf32>
    %148 = arith.divf %146, %147 : vector<8x1xf32>
    %149 = vector.broadcast %148 : vector<8x1xf32> to vector<8x32xf32>
    %150 = arith.mulf %149, %134 : vector<8x32xf32>
    %151 = arith.addf %150, %97 : vector<8x32xf32>
    %cst_40 = arith.constant dense<0.000000e+00> : vector<32xf32>
    %152 = vector.multi_reduction <add>, %151, %cst_40 [0] : vector<8x32xf32> to vector<32xf32>
    %153 = vector.shape_cast %152 : vector<32xf32> to vector<1x32xf32>
    %cst_41 = arith.constant 8.000000e+00 : f32
    %154 = vector.broadcast %cst_41 : f32 to vector<1x32xf32>
    %155 = arith.divf %153, %154 : vector<1x32xf32>
    %156 = vector.broadcast %155 : vector<1x32xf32> to vector<8x32xf32>
    %157 = arith.subf %151, %156 : vector<8x32xf32>
    %158 = arith.addf %157, %4 : vector<8x32xf32>
    %159 = vector.broadcast %155 : vector<1x32xf32> to vector<8x32xf32>
    %160 = arith.addf %158, %159 : vector<8x32xf32>
    %161 = vector.extract_strided_slice %160 {offsets = [7, 0], sizes = [1, 32], strides = [1, 1]} : vector<8x32xf32> to vector<1x32xf32>
    %cst_42 = arith.constant dense<0.000000e+00> : vector<1x32xf32>
    %162 = tpu.matmul %161, %12, %cst_42 {dimension_numbers = #tpu.dot_dimension_numbers<[1], [0], [0], [1], [0, 0, 1, 1], [], []>} : vector<1x32xf32>, vector<32x32xf32>, vector<1x32xf32> -> vector<1x32xf32>
    %163 = arith.addf %162, %13 : vector<1x32xf32>
    %c0_43 = arith.constant 0 : index
    %c2 = arith.constant 2 : index
    %c0_44 = arith.constant 0 : index
    %c0_45 = arith.constant 0 : index
    %164 = vector.load %arg1[%c0_43, %c2, %c0_44, %c0_45] : memref<1x4x14x16xf32, #tpu.memory_space<vmem>>, vector<1x1x14x16xf32>
    %165 = vector.shape_cast %164 : vector<1x1x14x16xf32> to vector<14x16xf32>
    %166 = vector.extract_strided_slice %165 {offsets = [0, 0], sizes = [8, 16], strides = [1, 1]} : vector<14x16xf32> to vector<8x16xf32>
    %167 = vector.extract_strided_slice %165 {offsets = [8, 0], sizes = [4, 16], strides = [1, 1]} : vector<14x16xf32> to vector<4x16xf32>
    %168 = vector.extract_strided_slice %165 {offsets = [12, 0], sizes = [2, 16], strides = [1, 1]} : vector<14x16xf32> to vector<2x16xf32>
    %cst_46 = arith.constant dense<0.000000e+00> : vector<8x32xf32>
    %169 = tpu.matmul %166, %1, %cst_46 {dimension_numbers = #tpu.dot_dimension_numbers<[1], [0], [0], [1], [0, 0, 1, 1], [], []>} : vector<8x16xf32>, vector<16x32xf32>, vector<8x32xf32> -> vector<8x32xf32>
    %170 = vector.broadcast %2 : vector<1x32xf32> to vector<8x32xf32>
    %171 = arith.addf %169, %170 : vector<8x32xf32>
    %cst_47 = arith.constant dense<0.000000e+00> : vector<4x32xf32>
    %172 = tpu.matmul %167, %1, %cst_47 {dimension_numbers = #tpu.dot_dimension_numbers<[1], [0], [0], [1], [0, 0, 1, 1], [], []>} : vector<4x16xf32>, vector<16x32xf32>, vector<4x32xf32> -> vector<4x32xf32>
    %173 = vector.broadcast %2 : vector<1x32xf32> to vector<4x32xf32>
    %174 = arith.addf %172, %173 : vector<4x32xf32>
    %cst_48 = arith.constant dense<0.000000e+00> : vector<2x32xf32>
    %175 = tpu.matmul %168, %1, %cst_48 {dimension_numbers = #tpu.dot_dimension_numbers<[1], [0], [0], [1], [0, 0, 1, 1], [], []>} : vector<2x16xf32>, vector<16x32xf32>, vector<2x32xf32> -> vector<2x32xf32>
    %176 = vector.broadcast %2 : vector<1x32xf32> to vector<2x32xf32>
    %177 = arith.addf %175, %176 : vector<2x32xf32>
    %178 = vector.extract_strided_slice %4 {offsets = [0, 0], sizes = [2, 32], strides = [1, 1]} : vector<8x32xf32> to vector<2x32xf32>
    %179 = arith.addf %177, %178 : vector<2x32xf32>
    %cst_49 = arith.constant dense<0.000000e+00> : vector<4x32xf32>
    %180 = tpu.matmul %14, %179, %cst_49 {dimension_numbers = #tpu.dot_dimension_numbers<[1], [0], [0], [1], [0, 0, 1, 1], [], []>} : vector<4x2xf32>, vector<2x32xf32>, vector<4x32xf32> -> vector<4x32xf32>
    %181 = vector.broadcast %5 : vector<1x32xf32> to vector<4x32xf32>
    %182 = arith.mulf %180, %181 : vector<4x32xf32>
    %183 = vector.broadcast %6 : vector<1x32xf32> to vector<4x32xf32>
    %184 = arith.mulf %174, %183 : vector<4x32xf32>
    %185 = arith.addf %182, %184 : vector<4x32xf32>
    %cst_50 = arith.constant dense<0.000000e+00> : vector<4xf32>
    %186 = vector.multi_reduction <add>, %185, %cst_50 [1] : vector<4x32xf32> to vector<4xf32>
    %187 = vector.shape_cast %186 : vector<4xf32> to vector<4x1xf32>
    %188 = vector.broadcast %9 : vector<1x1xf32> to vector<4x1xf32>
    %189 = arith.addf %187, %188 : vector<4x1xf32>
    %190 = arith.negf %189 : vector<4x1xf32>
    %191 = math.exp %190 : vector<4x1xf32>
    %cst_51 = arith.constant 1.000000e+00 : f32
    %192 = vector.broadcast %cst_51 : f32 to vector<4x1xf32>
    %193 = arith.addf %192, %191 : vector<4x1xf32>
    %194 = arith.divf %192, %193 : vector<4x1xf32>
    %195 = vector.broadcast %194 : vector<4x1xf32> to vector<4x32xf32>
    %196 = arith.mulf %195, %180 : vector<4x32xf32>
    %197 = arith.addf %196, %174 : vector<4x32xf32>
    %cst_52 = arith.constant dense<0.000000e+00> : vector<32xf32>
    %198 = vector.multi_reduction <add>, %197, %cst_52 [0] : vector<4x32xf32> to vector<32xf32>
    %199 = vector.shape_cast %198 : vector<32xf32> to vector<1x32xf32>
    %cst_53 = arith.constant 4.000000e+00 : f32
    %200 = vector.broadcast %cst_53 : f32 to vector<1x32xf32>
    %201 = arith.divf %199, %200 : vector<1x32xf32>
    %202 = vector.broadcast %201 : vector<1x32xf32> to vector<4x32xf32>
    %203 = arith.subf %197, %202 : vector<4x32xf32>
    %204 = vector.extract_strided_slice %4 {offsets = [0, 0], sizes = [4, 32], strides = [1, 1]} : vector<8x32xf32> to vector<4x32xf32>
    %205 = arith.addf %203, %204 : vector<4x32xf32>
    %206 = vector.broadcast %201 : vector<1x32xf32> to vector<4x32xf32>
    %207 = arith.addf %205, %206 : vector<4x32xf32>
    %cst_54 = arith.constant dense<0.000000e+00> : vector<8x32xf32>
    %208 = tpu.matmul %15, %207, %cst_54 {dimension_numbers = #tpu.dot_dimension_numbers<[1], [0], [0], [1], [0, 0, 1, 1], [], []>} : vector<8x4xf32>, vector<4x32xf32>, vector<8x32xf32> -> vector<8x32xf32>
    %209 = vector.broadcast %7 : vector<1x32xf32> to vector<8x32xf32>
    %210 = arith.mulf %208, %209 : vector<8x32xf32>
    %211 = vector.broadcast %8 : vector<1x32xf32> to vector<8x32xf32>
    %212 = arith.mulf %171, %211 : vector<8x32xf32>
    %213 = arith.addf %210, %212 : vector<8x32xf32>
    %cst_55 = arith.constant dense<0.000000e+00> : vector<8xf32>
    %214 = vector.multi_reduction <add>, %213, %cst_55 [1] : vector<8x32xf32> to vector<8xf32>
    %215 = vector.shape_cast %214 : vector<8xf32> to vector<8x1xf32>
    %216 = vector.broadcast %10 : vector<1x1xf32> to vector<8x1xf32>
    %217 = arith.addf %215, %216 : vector<8x1xf32>
    %218 = arith.negf %217 : vector<8x1xf32>
    %219 = math.exp %218 : vector<8x1xf32>
    %cst_56 = arith.constant 1.000000e+00 : f32
    %220 = vector.broadcast %cst_56 : f32 to vector<8x1xf32>
    %221 = arith.addf %220, %219 : vector<8x1xf32>
    %222 = arith.divf %220, %221 : vector<8x1xf32>
    %223 = vector.broadcast %222 : vector<8x1xf32> to vector<8x32xf32>
    %224 = arith.mulf %223, %208 : vector<8x32xf32>
    %225 = arith.addf %224, %171 : vector<8x32xf32>
    %cst_57 = arith.constant dense<0.000000e+00> : vector<32xf32>
    %226 = vector.multi_reduction <add>, %225, %cst_57 [0] : vector<8x32xf32> to vector<32xf32>
    %227 = vector.shape_cast %226 : vector<32xf32> to vector<1x32xf32>
    %cst_58 = arith.constant 8.000000e+00 : f32
    %228 = vector.broadcast %cst_58 : f32 to vector<1x32xf32>
    %229 = arith.divf %227, %228 : vector<1x32xf32>
    %230 = vector.broadcast %229 : vector<1x32xf32> to vector<8x32xf32>
    %231 = arith.subf %225, %230 : vector<8x32xf32>
    %232 = arith.addf %231, %4 : vector<8x32xf32>
    %233 = vector.broadcast %229 : vector<1x32xf32> to vector<8x32xf32>
    %234 = arith.addf %232, %233 : vector<8x32xf32>
    %235 = vector.extract_strided_slice %234 {offsets = [7, 0], sizes = [1, 32], strides = [1, 1]} : vector<8x32xf32> to vector<1x32xf32>
    %cst_59 = arith.constant dense<0.000000e+00> : vector<1x32xf32>
    %236 = tpu.matmul %235, %12, %cst_59 {dimension_numbers = #tpu.dot_dimension_numbers<[1], [0], [0], [1], [0, 0, 1, 1], [], []>} : vector<1x32xf32>, vector<32x32xf32>, vector<1x32xf32> -> vector<1x32xf32>
    %237 = arith.addf %236, %13 : vector<1x32xf32>
    %c0_60 = arith.constant 0 : index
    %c3 = arith.constant 3 : index
    %c0_61 = arith.constant 0 : index
    %c0_62 = arith.constant 0 : index
    %238 = vector.load %arg1[%c0_60, %c3, %c0_61, %c0_62] : memref<1x4x14x16xf32, #tpu.memory_space<vmem>>, vector<1x1x14x16xf32>
    %239 = vector.shape_cast %238 : vector<1x1x14x16xf32> to vector<14x16xf32>
    %240 = vector.extract_strided_slice %239 {offsets = [0, 0], sizes = [8, 16], strides = [1, 1]} : vector<14x16xf32> to vector<8x16xf32>
    %241 = vector.extract_strided_slice %239 {offsets = [8, 0], sizes = [4, 16], strides = [1, 1]} : vector<14x16xf32> to vector<4x16xf32>
    %242 = vector.extract_strided_slice %239 {offsets = [12, 0], sizes = [2, 16], strides = [1, 1]} : vector<14x16xf32> to vector<2x16xf32>
    %cst_63 = arith.constant dense<0.000000e+00> : vector<8x32xf32>
    %243 = tpu.matmul %240, %1, %cst_63 {dimension_numbers = #tpu.dot_dimension_numbers<[1], [0], [0], [1], [0, 0, 1, 1], [], []>} : vector<8x16xf32>, vector<16x32xf32>, vector<8x32xf32> -> vector<8x32xf32>
    %244 = vector.broadcast %2 : vector<1x32xf32> to vector<8x32xf32>
    %245 = arith.addf %243, %244 : vector<8x32xf32>
    %cst_64 = arith.constant dense<0.000000e+00> : vector<4x32xf32>
    %246 = tpu.matmul %241, %1, %cst_64 {dimension_numbers = #tpu.dot_dimension_numbers<[1], [0], [0], [1], [0, 0, 1, 1], [], []>} : vector<4x16xf32>, vector<16x32xf32>, vector<4x32xf32> -> vector<4x32xf32>
    %247 = vector.broadcast %2 : vector<1x32xf32> to vector<4x32xf32>
    %248 = arith.addf %246, %247 : vector<4x32xf32>
    %cst_65 = arith.constant dense<0.000000e+00> : vector<2x32xf32>
    %249 = tpu.matmul %242, %1, %cst_65 {dimension_numbers = #tpu.dot_dimension_numbers<[1], [0], [0], [1], [0, 0, 1, 1], [], []>} : vector<2x16xf32>, vector<16x32xf32>, vector<2x32xf32> -> vector<2x32xf32>
    %250 = vector.broadcast %2 : vector<1x32xf32> to vector<2x32xf32>
    %251 = arith.addf %249, %250 : vector<2x32xf32>
    %252 = vector.extract_strided_slice %4 {offsets = [0, 0], sizes = [2, 32], strides = [1, 1]} : vector<8x32xf32> to vector<2x32xf32>
    %253 = arith.addf %251, %252 : vector<2x32xf32>
    %cst_66 = arith.constant dense<0.000000e+00> : vector<4x32xf32>
    %254 = tpu.matmul %14, %253, %cst_66 {dimension_numbers = #tpu.dot_dimension_numbers<[1], [0], [0], [1], [0, 0, 1, 1], [], []>} : vector<4x2xf32>, vector<2x32xf32>, vector<4x32xf32> -> vector<4x32xf32>
    %255 = vector.broadcast %5 : vector<1x32xf32> to vector<4x32xf32>
    %256 = arith.mulf %254, %255 : vector<4x32xf32>
    %257 = vector.broadcast %6 : vector<1x32xf32> to vector<4x32xf32>
    %258 = arith.mulf %248, %257 : vector<4x32xf32>
    %259 = arith.addf %256, %258 : vector<4x32xf32>
    %cst_67 = arith.constant dense<0.000000e+00> : vector<4xf32>
    %260 = vector.multi_reduction <add>, %259, %cst_67 [1] : vector<4x32xf32> to vector<4xf32>
    %261 = vector.shape_cast %260 : vector<4xf32> to vector<4x1xf32>
    %262 = vector.broadcast %9 : vector<1x1xf32> to vector<4x1xf32>
    %263 = arith.addf %261, %262 : vector<4x1xf32>
    %264 = arith.negf %263 : vector<4x1xf32>
    %265 = math.exp %264 : vector<4x1xf32>
    %cst_68 = arith.constant 1.000000e+00 : f32
    %266 = vector.broadcast %cst_68 : f32 to vector<4x1xf32>
    %267 = arith.addf %266, %265 : vector<4x1xf32>
    %268 = arith.divf %266, %267 : vector<4x1xf32>
    %269 = vector.broadcast %268 : vector<4x1xf32> to vector<4x32xf32>
    %270 = arith.mulf %269, %254 : vector<4x32xf32>
    %271 = arith.addf %270, %248 : vector<4x32xf32>
    %cst_69 = arith.constant dense<0.000000e+00> : vector<32xf32>
    %272 = vector.multi_reduction <add>, %271, %cst_69 [0] : vector<4x32xf32> to vector<32xf32>
    %273 = vector.shape_cast %272 : vector<32xf32> to vector<1x32xf32>
    %cst_70 = arith.constant 4.000000e+00 : f32
    %274 = vector.broadcast %cst_70 : f32 to vector<1x32xf32>
    %275 = arith.divf %273, %274 : vector<1x32xf32>
    %276 = vector.broadcast %275 : vector<1x32xf32> to vector<4x32xf32>
    %277 = arith.subf %271, %276 : vector<4x32xf32>
    %278 = vector.extract_strided_slice %4 {offsets = [0, 0], sizes = [4, 32], strides = [1, 1]} : vector<8x32xf32> to vector<4x32xf32>
    %279 = arith.addf %277, %278 : vector<4x32xf32>
    %280 = vector.broadcast %275 : vector<1x32xf32> to vector<4x32xf32>
    %281 = arith.addf %279, %280 : vector<4x32xf32>
    %cst_71 = arith.constant dense<0.000000e+00> : vector<8x32xf32>
    %282 = tpu.matmul %15, %281, %cst_71 {dimension_numbers = #tpu.dot_dimension_numbers<[1], [0], [0], [1], [0, 0, 1, 1], [], []>} : vector<8x4xf32>, vector<4x32xf32>, vector<8x32xf32> -> vector<8x32xf32>
    %283 = vector.broadcast %7 : vector<1x32xf32> to vector<8x32xf32>
    %284 = arith.mulf %282, %283 : vector<8x32xf32>
    %285 = vector.broadcast %8 : vector<1x32xf32> to vector<8x32xf32>
    %286 = arith.mulf %245, %285 : vector<8x32xf32>
    %287 = arith.addf %284, %286 : vector<8x32xf32>
    %cst_72 = arith.constant dense<0.000000e+00> : vector<8xf32>
    %288 = vector.multi_reduction <add>, %287, %cst_72 [1] : vector<8x32xf32> to vector<8xf32>
    %289 = vector.shape_cast %288 : vector<8xf32> to vector<8x1xf32>
    %290 = vector.broadcast %10 : vector<1x1xf32> to vector<8x1xf32>
    %291 = arith.addf %289, %290 : vector<8x1xf32>
    %292 = arith.negf %291 : vector<8x1xf32>
    %293 = math.exp %292 : vector<8x1xf32>
    %cst_73 = arith.constant 1.000000e+00 : f32
    %294 = vector.broadcast %cst_73 : f32 to vector<8x1xf32>
    %295 = arith.addf %294, %293 : vector<8x1xf32>
    %296 = arith.divf %294, %295 : vector<8x1xf32>
    %297 = vector.broadcast %296 : vector<8x1xf32> to vector<8x32xf32>
    %298 = arith.mulf %297, %282 : vector<8x32xf32>
    %299 = arith.addf %298, %245 : vector<8x32xf32>
    %cst_74 = arith.constant dense<0.000000e+00> : vector<32xf32>
    %300 = vector.multi_reduction <add>, %299, %cst_74 [0] : vector<8x32xf32> to vector<32xf32>
    %301 = vector.shape_cast %300 : vector<32xf32> to vector<1x32xf32>
    %cst_75 = arith.constant 8.000000e+00 : f32
    %302 = vector.broadcast %cst_75 : f32 to vector<1x32xf32>
    %303 = arith.divf %301, %302 : vector<1x32xf32>
    %304 = vector.broadcast %303 : vector<1x32xf32> to vector<8x32xf32>
    %305 = arith.subf %299, %304 : vector<8x32xf32>
    %306 = arith.addf %305, %4 : vector<8x32xf32>
    %307 = vector.broadcast %303 : vector<1x32xf32> to vector<8x32xf32>
    %308 = arith.addf %306, %307 : vector<8x32xf32>
    %309 = vector.extract_strided_slice %308 {offsets = [7, 0], sizes = [1, 32], strides = [1, 1]} : vector<8x32xf32> to vector<1x32xf32>
    %cst_76 = arith.constant dense<0.000000e+00> : vector<1x32xf32>
    %310 = tpu.matmul %309, %12, %cst_76 {dimension_numbers = #tpu.dot_dimension_numbers<[1], [0], [0], [1], [0, 0, 1, 1], [], []>} : vector<1x32xf32>, vector<32x32xf32>, vector<1x32xf32> -> vector<1x32xf32>
    %311 = arith.addf %310, %13 : vector<1x32xf32>
    %312 = tpu.concatenate %89, %163, %237, %311 in 0 : vector<1x32xf32>, vector<1x32xf32>, vector<1x32xf32>, vector<1x32xf32> -> vector<4x32xf32>
    %c0_77 = arith.constant 0 : index
    %c0_78 = arith.constant 0 : index
    %c0_79 = arith.constant 0 : index
    %313 = vector.load %arg7[%c0_77, %c0_78, %c0_79] : memref<1x4x32xf32, #tpu.memory_space<vmem>>, vector<1x4x32xf32>
    %314 = vector.shape_cast %313 : vector<1x4x32xf32> to vector<4x32xf32>
    %315 = vector.shape_cast %312 : vector<4x32xf32> to vector<1x4x32xf32>
    tpu.vector_store %arg7[%c0_77, %c0_78, %c0_79], %315 {strides = array<i32>} : memref<1x4x32xf32, #tpu.memory_space<vmem>>, vector<1x4x32xf32>,
    return
  }
  func.func @transform_0(%arg0: i32) -> (i32, i32, i32, i32) {
    %c0_i32 = arith.constant 0 : i32
    %c0_i32_0 = arith.constant 0 : i32
    %c0_i32_1 = arith.constant 0 : i32
    %c0_i32_2 = arith.constant 0 : i32
    return %arg0, %c0_i32, %c0_i32_0, %c0_i32_1 : i32, i32, i32, i32
  }
  func.func @transform_1(%arg0: i32) -> (i32, i32) {
    %c0_i32 = arith.constant 0 : i32
    %c0_i32_0 = arith.constant 0 : i32
    %c0_i32_1 = arith.constant 0 : i32
    return %c0_i32, %c0_i32_0 : i32, i32
  }
  func.func @transform_2(%arg0: i32) -> (i32, i32) {
    %c0_i32 = arith.constant 0 : i32
    %c0_i32_0 = arith.constant 0 : i32
    %c0_i32_1 = arith.constant 0 : i32
    return %c0_i32, %c0_i32_0 : i32, i32
  }
  func.func @transform_3(%arg0: i32) -> (i32, i32) {
    %c0_i32 = arith.constant 0 : i32
    %c0_i32_0 = arith.constant 0 : i32
    %c0_i32_1 = arith.constant 0 : i32
    return %c0_i32, %c0_i32_0 : i32, i32
  }
  func.func @transform_4(%arg0: i32) -> (i32, i32) {
    %c0_i32 = arith.constant 0 : i32
    %c0_i32_0 = arith.constant 0 : i32
    %c0_i32_1 = arith.constant 0 : i32
    return %c0_i32, %c0_i32_0 : i32, i32
  }
  func.func @transform_5(%arg0: i32) -> (i32, i32) {
    %c0_i32 = arith.constant 0 : i32
    %c0_i32_0 = arith.constant 0 : i32
    %c0_i32_1 = arith.constant 0 : i32
    return %c0_i32, %c0_i32_0 : i32, i32
  }
  func.func @transform_6(%arg0: i32) -> (i32, i32, i32) {
    %c0_i32 = arith.constant 0 : i32
    %c0_i32_0 = arith.constant 0 : i32
    %c0_i32_1 = arith.constant 0 : i32
    return %arg0, %c0_i32, %c0_i32_0 : i32, i32, i32
  }
}

</mosaic_0001>

<bundles_post_ra>
// kernel: timeseek_forward.2
= control target key start
LH: loop header
LB: loop body
LE: loop exit
PB: predicated region body
PF: predicated region fallthrough
CT: control target
= control target key end

     0   :  { %v110_v0 = vmov 5   ;;  %v111_v1 = vmov 3   ;;  %v112_v3 = vmov 0   ;;  %v113_v4 = vmov 4   ;;  %s170_s2 = inlined_call_operand.vmem [shape: f32[1,8], index: 2, kind: input, shape index: {}]   ;;  %s171_s1 = inlined_call_operand.vmem [shape: f32[4,8,32], index: 1, kind: input, shape index: {}]   ;;  %s172_s0 = inlined_call_operand.vmem [shape: f32[2,8,64], index: 0, kind: input, shape index: {}]   ;;  %s173_s3 = inlined_call_operand.vmem [shape: f32[8,64], index: 3, kind: output, shape index: {0}]   ;;  %s174_s4 = inlined_call_operand.vmem [shape: f32[8,32], index: 4, kind: output, shape index: {1}]  }
   0x1   :  { %103 = vset.pattern.permute.xlu1 %v110_v0  ;;  %101 = vset.pattern.permute.xlu0 %v111_v1  ;;  %v88_v2 = vld [vmem:[%s170_s2] ss:$0 sm:$0xff]  ;;  %v114_v5 = vmov 1   ;;  %v115_v6 = vmov 6   ;;  %v116_v7 = vmov 2   ;;  %v117_v8 = vmov 7  }
   0x2   :  { %60 = vperm.xlu1 %103, %v88_v2   ;;  %45 = vperm.xlu0 %101, %v88_v2   ;;  %v43_v11 = vld [vmem:[%s171_s1] sm:$0xff]  ;;  %v90_v12 = vld [vmem:[%s171_s1 + $0x8] sm:$0xff]  ;;  %v91_v19 = vld [vmem:[%s171_s1 + $0x10] sm:$0xff]  ;;  %vm41_vm0 = vcmask 523264   ;;  %vm78_vm1 = vcmask 261120  }
   0x3   :  { %v17_v17 = vld [vmem:[%s172_s0] sm:$0xff]  ;;  %v89_v18 = vld [vmem:[%s172_s0 + $0x8] sm:$0xff]  ;;  %v92_v25 = vld [vmem:[%s171_s1 + $0x18] sm:$0xff] }
   0x6   :  { %104 = vset.pattern.permute.xlu1 %v112_v3  ;;  %102 = vset.pattern.permute.xlu0 %v113_v4 }
   0x7   :  { %24 = vperm.xlu1 %104, %v88_v2   ;;  %52 = vperm.xlu0 %102, %v88_v2  }
   0xb   :  { %105 = vset.pattern.permute.xlu1 %v114_v5  ;;  %106 = vset.pattern.permute.xlu0 %v115_v6 }
   0xc   :  { %31 = vperm.xlu1 %105, %v88_v2   ;;  %68 = vperm.xlu0 %106, %v88_v2  }
  0x10   :  { %107 = vset.pattern.permute.xlu1 %v116_v7  ;;  %109 = vset.pattern.permute.xlu0 %v117_v8 }
  0x11   :  { %37 = vperm.xlu1 %107, %v88_v2  }
  0x15   :  { %108 = vset.pattern.permute.xlu1 %v117_v8 }
  0x16   :  { %74 = vperm.xlu1 %108, %v88_v2  }
  0x81   :  { %v61_v9 = vpop.permute.xlu1 %60  ;;  %v46_v10 = vpop.permute.xlu0 %45 }
  0x82   :  { %v48_v15 = vmul.f32 %v46_v10, %v43_v11  ;;  %v63_v26 = vmul.f32 %v91_v19, %v61_v9 }
  0x86   :  { %v25_v13 = vpop.permute.xlu1 %24  ;;  %v53_v14 = vpop.permute.xlu0 %52 }
  0x87   :  { %v55_v16 = vmul.f32 %v90_v12, %v53_v14  ;;  %v27_v21 = vmul.f32 %v25_v13, %v17_v17 }
  0x89   :  { %v56_v22 = vadd.f32 %v55_v16, %v48_v15 }
  0x8b   :  { %v32_v20 = vpop.permute.xlu1 %31  ;;  %v69_v24 = vpop.permute.xlu0 %68  ;;  %v64_v30 = vadd.f32 %v63_v26, %v56_v22 }
  0x8c   :  { %v34_v23 = vmul.f32 %v89_v18, %v32_v20  ;;  %v71_v28 = vmul.f32 %v92_v25, %v69_v24 }
  0x8e   :  { %v35_v27 = vadd.f32 %v34_v23, %v27_v21  ;;  %v72_v32 = vadd.f32 %v71_v28, %v64_v30 }
  0x90   :  { %v38_v29 = vpop.permute.xlu1 %37 }
  0x91   :  { %v40_v31 = vadd.f32 %v38_v29, %v35_v27 }
  0x93   :  { %42 = vst.msk [vmem:[%s173_s3] sm:$0xff] %vm41_vm0, %v40_v31 }
  0x95   :  { %v75_v33 = vpop.permute.xlu1 %74 }
  0x96   :  { %v77_v34 = vadd.f32 %v75_v33, %v72_v32 }
  0x98   :  { %79 = vst.msk [vmem:[%s174_s4] sm:$0xff] %vm78_vm1, %v77_v34 }

// kernel: timeseek_forward.3
= control target key start
LH: loop header
LB: loop body
LE: loop exit
PB: predicated region body
PF: predicated region fallthrough
CT: control target
= control target key end

     0   :  { %s2842_s21 = smov 0   ;;  %s3155_s0 = inlined_call_operand.vmem [shape: f32[2,4,14,16], index: 0, kind: input, shape index: {}]   ;;  %s3156_s1 = inlined_call_operand.vmem [shape: f32[17,32], index: 1, kind: input, shape index: {}]   ;;  %s3157_s2 = inlined_call_operand.vmem [shape: f32[13,32], index: 2, kind: input, shape index: {}]   ;;  %s3158_s3 = inlined_call_operand.vmem [shape: f32[33,32], index: 3, kind: input, shape index: {}]   ;;  %s3159_s4 = inlined_call_operand.vmem [shape: f32[4,2], index: 4, kind: input, shape index: {}]   ;;  %s3160_s5 = inlined_call_operand.vmem [shape: f32[8,4], index: 5, kind: input, shape index: {}]   ;;  %s3161_s6 = inlined_call_operand.vmem [shape: f32[2,4,32], index: 6, kind: output, shape index: {}]  }
   0x1 LB: > { %s2388_s22 = sadd.s32 4294967295, %s2800_s21   ;;  %p2392_p0 = scmp.ge.s32.totalorder %s2800_s21, 1  ;;  %s2800_s21 = sphi %s2842_s21, %s16_s21  }
   0x2   : > { %p212_p1 = scmp.lt.s32.totalorder %s2800_s21, 3 }
   0x4   : > { %p213_p2 = pnand %p2392_p0, %p212_p1 }
   0x5   : > { %v250_v0 = vld [vmem:[%s3156_s1] sm:$0xff] (!%p213_p2)  ;;  %v251_v1 = vld [vmem:[%s3156_s1 + $0x8] sm:$0xff] (!%p213_p2)  ;;  %p241_p3 = scmp.lt.s32.totalorder (!%p213_p2), %s2388_s22, 1  ;;  %v2802_v2 = vmov (!%p213_p2), 0.0|0.0   ;;  %vm2803_vm0 = vmmov (!%p213_p2), 0   ;;  %v2804_v4 = vmov (!%p213_p2), 0.0   ;;  %v567_v19 = vlaneseq (!%p213_p2) }
   0x6   : > { %216 = sbr.rel (%p213_p2) target bundleno = 5449 (0x1549), region = 44  ;;  %2692 = vmatprep.subr.bf16.mxu0 (!%p213_p2), %v2802_v2  ;;  %v2857_v3 = vpack.c.bf16 (!%p213_p2), %v251_v1, %v250_v0  ;;  %2536 = vmatprep.mubr.msk.f32.mxu0 (!%p213_p2), %vm2803_vm0, %v2804_v4  ;;  %vm268_vm1 = vcmask (!%p213_p2), 130048   ;;  %v2892_v8 = vld [vmem:[%s3156_s1 + $0x10] ss:$0 sm:$0xff] (!%p213_p2)  ;;  %v2899_v11 = vld [vmem:[%s3157_s2] sm:$0xff] (!%p213_p2)  ;;  %vm493_vm2 = vcmask (!%p213_p2), 1041408  }
   0x7   : > { %2686 = vmatprep.subr.bf16.mxu1 (!%p213_p2), %v2802_v2  ;;  %2522 = vmatprep.mubr.msk.f32.mxu1 (!%p213_p2), %vm2803_vm0, %v2804_v4  ;;  %v2906_v17 = vld [vmem:[%s3159_s4] sm:$0xf] (!%p213_p2)  ;;  %vm489_vm3 = vcmask (!%p213_p2), 15360   ;;  %v568_v20 = vshrl.u32 (!%p213_p2), %v567_v19, 7  ;;  %v254_v23 = vld [vmem:[%s3157_s2 + $0x8] sm:$0x1f] (!%p213_p2) }
   0x8   : > { %2694 = vmatpush3.bf16.msra.mxu0 (!%p213_p2), %v2857_v3  ;;  %2688 = vmatpush3.bf16.msra.mxu1 (!%p213_p2), %v2857_v3  ;;  %vm578_vm4 = vcmask (!%p213_p2), 257024   ;;  %v2805_v33 = vmov (!%p213_p2), 0   ;;  %vm616_vm5 = vcmask (!%p213_p2), 1043456   ;;  %v2933_v56 = vld [vmem:[%s3160_s5] sm:$0xff] (!%p213_p2)  ;;  %vm612_vm6 = vcmask (!%p213_p2), 31744  }
   0x9   : > { %2689 = vmatprep.subr.bf16.mxu1 (!%p213_p2), %v2802_v2  ;;  %2544 = vmatprep.subr.mxu0 (!%p213_p2), %v2804_v4  ;;  %v574_v21 = vsub.s32 (!%p213_p2), 1, %v568_v20  ;;  %v569_v22 = vsub.s32 (!%p213_p2), 0, %v568_v20  ;;  %v584_v34 = vsub.s32 (!%p213_p2), 4, %v568_v20  ;;  %v697_v57 = vsub.s32 (!%p213_p2), 3, %v568_v20 }
   0xa   : > { %2759 = vset.pattern.permute.xlu0 (!%p213_p2), %v2805_v33  ;;  %v692_v58 = vsub.s32 (!%p213_p2), 2, %v568_v20  ;;  %vm701_vm7 = vcmask (!%p213_p2), 261120   ;;  %v257_v20 = vld [vmem:[%s3158_s3 + $0x10] sm:$0xff] (!%p213_p2)  ;;  %vm2329_vm8 = vcmask (!%p213_p2), 1040384   ;;  %vm2332_vm9 = vcmask (!%p213_p2), 1042432  }
   0xb   : > { %v2918_v25 = vrot.slane (!%p213_p2), %v254_v23, %v574_v21  ;;  %v2920_v26 = vrot.slane (!%p213_p2), %v254_v23, %v569_v22  ;;  %v2925_v35 = vrot.slane (!%p213_p2), %v254_v23, %v584_v34  ;;  %v2945_v60 = vrot.slane (!%p213_p2), %v254_v23, %v697_v57  ;;  %v258_v21 = vld [vmem:[%s3158_s3 + $0x18] sm:$0xff] (!%p213_p2) }
   0xc   : > { %v2947_v61 = vrot.slane (!%p213_p2), %v254_v23, %v692_v58  ;;  %v2970_v22 = vpack.c.bf16 (!%p213_p2), %v258_v21, %v257_v20 }
   0xd   : > { %s3163_s22 = smov (!%p241_p3, %s2388_s22), 1 }
   0xe   : > { %s2445_s27 = sshll.u32 %s3163_s22, 6  ;;  %s2395_s29 = sshll.u32 %s3163_s22, 2 }
   0xf   : > { %s2874_s30 = scalar_lea.vmem %s3155_s0, %s2445_s27  ;;  %s249_s8 = scalar_lea.vmem %s3161_s6, %s2395_s29 }
  0x10   : > { %v263_v5 = vld [vmem:[%s2874_s30 + $0x8] sm:$0x3f]  ;;  %v262_v6 = vld [vmem:[%s2874_s30] sm:$0xff] }
  0x11   : > { %v415_v7 = vrot.slane %v263_v5, 4  ;;  %2523 = vmatmul.mubr.msk.f32.vlgmr.msra.gmra.mrb[0].mxu1 %vm268_vm1, %v262_v6 }
  0x12   : > { %2691 = vmatpush3.bf16.msra.mxu1 %v2857_v3  ;;  %2529 = vmatprep.mubr.msk.f32.mxu1 %vm2803_vm0, %v2804_v4 }
  0x13   : > { %2537 = vmatmul.mubr.msk.f32.vlgmr.msra.gmra.mrb[0].mxu0 %vm268_vm1, %v415_v7  ;;  %2539 = vmatprep.subr.mxu1 %v2804_v4  ;;  %v2806_v7 = vmov 1  }
  0x14   : > { %2546 = vmatprep.mubr.msk.f32.mxu0 %vm2803_vm0, %v2804_v4  ;;  %2760 = vset.pattern.permute.xlu1 %v2806_v7 }
  0x15   : > { %2530 = vmatmul.mubr.msk.f32.vlgmr.msra.gmra.mrb[2].mxu1 %vm268_vm1, %v263_v5 }
  0x16   : > { %2541 = vmatprep.mubr.msk.f32.mxu1 %vm2803_vm0, %v2804_v4 }
  0xe4   : > { %v2894_v9 = vpop.f32.mrb[0].mxu1 }
  0xe5   : > { %v2524_v10 = vpop.f32.mrb[1].mxu1  ;;  %v339_v59 = vadd.f32 %v2892_v8, %v2894_v9 }
  0xe6   : > { %v484_v12 = vpop.f32.mrb[0].mxu0 }
  0xe7   : > { %v485_v13 = vadd.f32 %v2892_v8, %v484_v12  ;;  %v2538_v14 = vpop.f32.mrb[1].mxu0  ;;  %v699_v63 = vmul.f32 %v2945_v60, %v339_v59 }
  0xe8   : > { %v411_v15 = vpop.f32.mrb[2].mxu1 }
  0xe9   : > { %v488_v16 = vadd.f32 %v485_v13, %v2899_v11  ;;  %v2531_v18 = vpop.f32.mrb[3].mxu1  ;;  %v412_v24 = vadd.f32 %v2892_v8, %v411_v15 }
  0xea   : > { %v256_v18 = vld [vmem:[%s3158_s3 + $0x8] sm:$0xff] }
  0xeb   : > { %2540 = vmatpush3.msk.msra.mxu1 %vm493_vm2, %v488_v16  ;;  %v576_v28 = vmul.f32 %v2918_v25, %v412_v24  ;;  %v255_v16 = vld [vmem:[%s3158_s3] sm:$0xff] }
  0xec   : > { %2542 = vmatmul.mubr.msk.f32.vlgmr.msra.gmra.mrb[4].mxu1 %vm489_vm3, %v2906_v17  ;;  %2695 = vmatprep.subr.bf16.mxu1 %v2802_v2  ;;  %v2960_v19 = vpack.c.bf16 %v256_v18, %v255_v16 }
  0xed   : > { %2557 = vmatprep.mubr.msk.f32.mxu1 %vm2803_vm0, %v2804_v4 }
  0xee   : > { %2697 = vmatpush3.bf16.msra.mxu1 %v2960_v19 }
  0xef   : > { %2698 = vmatprep.subr.bf16.mxu1 %v2802_v2 }
  0xf2   : > { %2700 = vmatpush3.bf16.msra.mxu1 %v2970_v22 }
  0xf3   : > { %2707 = vmatprep.subr.bf16.mxu1 %v2802_v2 }
 0x1bf   : > { %v563_v27 = vpop.f32.mrb[4].mxu1 }
 0x1c0   : > { %v571_v29 = vmul.f32 %v2920_v26, %v563_v27  ;;  %v2543_v30 = vpop.f32.mrb[5].mxu1 }
 0x1c2   : > { %v577_v31 = vadd.f32 %v576_v28, %v571_v29 }
 0x1c4   : > { %v579_v32 = vsel %vm578_vm4, %v577_v31, 0.0 }
 0x1c5   : > { %580 = vadd.xlane.f32.xlu0 %v579_v32 }
 0x252   : > { %v581_v36 = vpop.xlane.xlu0 %580 }
 0x253   : > { %v586_v37 = vadd.f32 %v2925_v35, %v581_v36 }
 0x255   : > { %v2402_v38 = vmul.f32 -1.442695, %v586_v37 }
 0x257   : > { %2762 = vpow2.f32 %v2402_v38 }
 0x261   : > { %v2763_v39 = vpop.eup %2762 }
 0x262   : > { %v590_v40 = vadd.f32 1.0, %v2763_v39 }
 0x264   : > { %2764 = vrcp.f32 %v590_v40  ;;  %v2408_v40 = vld [vmem:[%s2874_s30 + $0x18] sm:$0x3f] }
 0x26e   : > { %v2765_v41 = vpop.eup %2764 }
 0x26f   : > { %595 = vperm.xlu0 %2759, %v2765_v41  }
 0x2ee   : > { %v596_v42 = vpop.permute.xlu0 %595 }
 0x2ef   : > { %v598_v43 = vmul.f32 %v596_v42, %v563_v27  ;;  %v954_v42 = vrot.slane %v2408_v40, 4 }
 0x2f1   : > { %v599_v44 = vadd.f32 %v598_v43, %v412_v24  ;;  %v2407_v43 = vld [vmem:[%s2874_s30 + $0x10] sm:$0xff] }
 0x2f3   : > { %v600_v45 = vsel %vm578_vm4, %v599_v44, 0.0 }
 0x2f4   : > { %v601_v46 = vrot.slane %v600_v45, 4 }
 0x2f6   : > { %v602_v47 = vadd.f32 %v601_v46, %v600_v45 }
 0x2f8   : > { %v603_v48 = vrot.slane %v602_v47, 2 }
 0x2fa   : > { %v604_v49 = vadd.f32 %v603_v48, %v602_v47 }
 0x2fc   : > { %v605_v50 = vrot.slane %v604_v49, 1 }
 0x2fe   : > { %v606_v51 = vadd.f32 %v605_v50, %v604_v49 }
 0x300   : > { %v608_v52 = vmul.f32 0.25, %v606_v51 }
 0x302   : > { %v609_v53 = vsub.f32 %v599_v44, %v608_v52 }
 0x304   : > { %v610_v54 = vadd.f32 %v609_v53, %v2899_v11 }
 0x306   : > { %v611_v55 = vadd.f32 %v610_v54, %v608_v52 }
 0x308   : > { %2545 = vmatpush3.msk.msra.mxu0 %vm616_vm5, %v611_v55 }
 0x309   : > { %2547 = vmatmul.mubr.msk.f32.vlgmr.msra.gmra.mrb[2].mxu0 %vm612_vm6, %v2933_v56  ;;  %2701 = vmatprep.subr.bf16.mxu0 %v2802_v2 }
 0x30a   : > { %2703 = vmatpush3.bf16.msra.mxu0 %v2857_v3  ;;  %2564 = vmatprep.mubr.msk.f32.mxu0 %vm2803_vm0, %v2804_v4 }
 0x30b   : > { %2704 = vmatprep.subr.bf16.mxu0 %v2802_v2 }
 0x30d   : > { %2565 = vmatmul.mubr.msk.f32.vlgmr.msra.gmra.mrb[4].mxu0 %vm268_vm1, %v2407_v43 }
 0x30e   : > { %2706 = vmatpush3.bf16.msra.mxu0 %v2857_v3  ;;  %2571 = vmatprep.mubr.msk.f32.mxu0 %vm2803_vm0, %v2804_v4 }
 0x30f   : > { %2581 = vmatprep.subr.mxu0 %v2804_v4 }
 0x311   : > { %2572 = vmatmul.mubr.msk.f32.vlgmr.msra.gmra.mrb[6].mxu0 %vm268_vm1, %v2408_v40 }
 0x312   : > { %2583 = vmatprep.mubr.msk.f32.mxu0 %vm2803_vm0, %v2804_v4 }
 0x3dc   : > { %v686_v62 = vpop.f32.mrb[2].mxu0 }
 0x3dd   : > { %v694_v0 = vmul.f32 %v2947_v61, %v686_v62  ;;  %v2548_v1 = vpop.f32.mrb[3].mxu0 }
 0x3df   : > { %v700_v5 = vadd.f32 %v699_v63, %v694_v0 }
 0x3e0   : > { %v877_v50 = vpop.f32.mrb[4].mxu0 }
 0x3e1   : > { %v702_v6 = vsel %vm701_vm7, %v700_v5, 0.0  ;;  %v2566_v51 = vpop.f32.mrb[5].mxu0 }
 0x3e2   : > { %703 = vadd.xlane.f32.xlu1 %v702_v6 }
 0x3e4   : > { %v950_v52 = vpop.f32.mrb[6].mxu0 }
 0x3e5   : > { %v2573_v53 = vpop.f32.mrb[7].mxu0  ;;  %v951_v54 = vadd.f32 %v2892_v8, %v950_v52 }
 0x3e7   : > { %v1102_v57 = vmul.f32 %v951_v54, %v2918_v25 }
 0x46f   : > { %v704_v10 = vpop.xlane.xlu1 %703 }
 0x470   : > { %v705_v9 = vadd.f32 %v704_v10, %v2925_v35 }
 0x472   : > { %v2405_v12 = vmul.f32 -1.442695, %v705_v9 }
 0x474   : > { %2766 = vpow2.f32 %v2405_v12 }
 0x47e   : > { %v2767_v13 = vpop.eup %2766 }
 0x47f   : > { %v709_v14 = vadd.f32 1.0, %v2767_v13 }
 0x481   : > { %2768 = vrcp.f32 %v709_v14 }
 0x48b   : > { %v2769_v15 = vpop.eup %2768 }
 0x48c   : > { %714 = vperm.xlu1 %2760, %v2769_v15  }
 0x50b   : > { %v715_v23 = vpop.permute.xlu1 %714 }
 0x50c   : > { %v717_v24 = vmul.f32 %v715_v23, %v686_v62 }
 0x50e   : > { %v718_v27 = vadd.f32 %v717_v24, %v339_v59 }
 0x510   : > { %v719_v28 = vsel %vm701_vm7, %v718_v27, 0.0 }
 0x511   : > { %v720_v29 = vrot.slane %v719_v28, 4 }
 0x513   : > { %v721_v30 = vadd.f32 %v720_v29, %v719_v28 }
 0x515   : > { %v722_v31 = vrot.slane %v721_v30, 2 }
 0x517   : > { %v723_v32 = vadd.f32 %v722_v31, %v721_v30  ;;  %v878_v31 = vadd.f32 %v2892_v8, %v877_v50 }
 0x519   : > { %v724_v33 = vrot.slane %v723_v32, 1 }
 0x51b   : > { %v725_v34 = vadd.f32 %v724_v33, %v723_v32  ;;  %v1206_v33 = vmul.f32 %v878_v31, %v2945_v60 }
 0x51d   : > { %v727_v36 = vmul.f32 0.125, %v725_v34 }
 0x51f   : > { %v728_v37 = vsub.f32 %v718_v27, %v727_v36 }
 0x521   : > { %v729_v38 = vadd.f32 %v728_v37, %v2899_v11 }
 0x523   : > { %v730_v39 = vadd.f32 %v729_v38, %v727_v36 }
 0x525   : > { %v732_v41 = vrot.slane %v730_v39, 7 }
 0x527   : > { %2558 = vmatmul.mubr.msk.f32.vlgmr.msra.gmra.mrb[6].mxu1 %vm701_vm7, %v732_v41 }
 0x528   : > { %2709 = vmatpush3.bf16.msra.mxu1 %v2857_v3  ;;  %2578 = vmatprep.mubr.msk.f32.mxu1 %vm2803_vm0, %v2804_v4 }
 0x529   : > { %2586 = vmatprep.subr.mxu1 %v2804_v4 }
 0x52b   : > { %2579 = vmatmul.mubr.msk.f32.vlgmr.msra.gmra.mrb[8].mxu1 %vm268_vm1, %v954_v42 }
 0x52c   : > { %2588 = vmatprep.mubr.msk.f32.mxu1 %vm2803_vm0, %v2804_v4 }
 0x5fa   : > { %v2994_v44 = vpop.f32.mrb[6].mxu1 }
 0x5fb   : > { %v2559_v45 = vpop.f32.mrb[7].mxu1 }
 0x5fe   : > { %v1023_v46 = vpop.f32.mrb[8].mxu1 }
 0x5ff   : > { %v1024_v47 = vadd.f32 %v2892_v8, %v1023_v46  ;;  %v2580_v48 = vpop.f32.mrb[9].mxu1 }
 0x601   : > { %v1027_v49 = vadd.f32 %v1024_v47, %v2899_v11 }
 0x603   : > { %2582 = vmatpush3.msk.msra.mxu0 %vm493_vm2, %v1027_v49 }
 0x604   : > { %2584 = vmatmul.mubr.msk.f32.vlgmr.msra.gmra.mrb[8].mxu0 %vm489_vm3, %v2906_v17  ;;  %2710 = vmatprep.subr.bf16.mxu0 %v2802_v2 }
 0x605   : > { %2712 = vmatpush3.bf16.msra.mxu0 %v2960_v19  ;;  %2599 = vmatprep.mubr.msk.f32.mxu0 %vm2803_vm0, %v2804_v4 }
 0x606   : > { %2713 = vmatprep.subr.bf16.mxu0 %v2802_v2 }
 0x609   : > { %2715 = vmatpush3.bf16.msra.mxu0 %v2970_v22 }
 0x60a   : > { %2722 = vmatprep.subr.bf16.mxu0 %v2802_v2 }
 0x6d7   : > { %v1097_v55 = vpop.f32.mrb[8].mxu0 }
 0x6d8   : > { %v1101_v58 = vmul.f32 %v1097_v55, %v2920_v26  ;;  %v2585_v59 = vpop.f32.mrb[9].mxu0 }
 0x6da   : > { %v1103_v62 = vadd.f32 %v1102_v57, %v1101_v58 }
 0x6dc   : > { %v1104_v63 = vsel %vm578_vm4, %v1103_v62, 0.0 }
 0x6dd   : > { %1105 = vadd.xlane.f32.xlu1 %v1104_v63  ;;  %v2420_v63 = vld [vmem:[%s2874_s30 + $0x28] sm:$0x3f] }
 0x76a   : > { %v1106_v0 = vpop.xlane.xlu1 %1105 }
 0x76b   : > { %v1107_v1 = vadd.f32 %v1106_v0, %v2925_v35 }
 0x76d   : > { %v2414_v5 = vmul.f32 -1.442695, %v1107_v1  ;;  %v1459_v1 = vrot.slane %v2420_v63, 4 }
 0x76f   : > { %2770 = vpow2.f32 %v2414_v5  ;;  %v2419_v5 = vld [vmem:[%s2874_s30 + $0x20] sm:$0xff] }
 0x779   : > { %v2771_v6 = vpop.eup %2770 }
 0x77a   : > { %v1111_v10 = vadd.f32 1.0, %v2771_v6  ;;  %v3051_v6 = vld [vmem:[%s3158_s3 + $0x20] sm:$0x1] }
 0x77c   : > { %2772 = vrcp.f32 %v1111_v10 }
 0x786   : > { %v2773_v9 = vpop.eup %2772 }
 0x787   : > { %1116 = vperm.xlu0 %2759, %v2773_v9  }
 0x806   : > { %v1117_v12 = vpop.permute.xlu0 %1116 }
 0x807   : > { %v1119_v13 = vmul.f32 %v1117_v12, %v1097_v55 }
 0x809   : > { %v1120_v14 = vadd.f32 %v1119_v13, %v951_v54  ;;  %v802_v13 = vadd.f32 %v2994_v44, %v3051_v6 }
 0x80b   : > { %v1121_v15 = vsel %vm578_vm4, %v1120_v14, 0.0 }
 0x80c   : > { %v1122_v16 = vrot.slane %v1121_v15, 4 }
 0x80e   : > { %v1123_v18 = vadd.f32 %v1122_v16, %v1121_v15 }
 0x810   : > { %v1124_v20 = vrot.slane %v1123_v18, 2 }
 0x812   : > { %v1125_v21 = vadd.f32 %v1124_v20, %v1123_v18 }
 0x814   : > { %v1126_v23 = vrot.slane %v1125_v21, 1 }
 0x816   : > { %v1127_v24 = vadd.f32 %v1126_v23, %v1125_v21 }
 0x818   : > { %v1128_v27 = vmul.f32 0.25, %v1127_v24 }
 0x81a   : > { %v1129_v28 = vsub.f32 %v1120_v14, %v1128_v27 }
 0x81c   : > { %v1130_v29 = vadd.f32 %v1129_v28, %v2899_v11 }
 0x81e   : > { %v1131_v30 = vadd.f32 %v1130_v29, %v1128_v27 }
 0x820   : > { %2587 = vmatpush3.msk.msra.mxu1 %vm616_vm5, %v1131_v30 }
 0x821   : > { %2589 = vmatmul.mubr.msk.f32.vlgmr.msra.gmra.mrb[10].mxu1 %vm612_vm6, %v2933_v56  ;;  %2716 = vmatprep.subr.bf16.mxu1 %v2802_v2 }
 0x822   : > { %2718 = vmatpush3.bf16.msra.mxu1 %v2857_v3  ;;  %2606 = vmatprep.mubr.msk.f32.mxu1 %vm2803_vm0, %v2804_v4 }
 0x823   : > { %2719 = vmatprep.subr.bf16.mxu1 %v2802_v2 }
 0x825   : > { %2607 = vmatmul.mubr.msk.f32.vlgmr.msra.gmra.mrb[12].mxu1 %vm268_vm1, %v2419_v5 }
 0x826   : > { %2721 = vmatpush3.bf16.msra.mxu1 %v2857_v3  ;;  %2613 = vmatprep.mubr.msk.f32.mxu1 %vm2803_vm0, %v2804_v4 }
 0x827   : > { %2623 = vmatprep.subr.mxu1 %v2804_v4 }
 0x829   : > { %2614 = vmatmul.mubr.msk.f32.vlgmr.msra.gmra.mrb[14].mxu1 %vm268_vm1, %v2420_v63 }
 0x82a   : > { %2625 = vmatprep.mubr.msk.f32.mxu1 %vm2803_vm0, %v2804_v4 }
 0x8f4   : > { %v1201_v32 = vpop.f32.mrb[10].mxu1 }
 0x8f5   : > { %v1205_v34 = vmul.f32 %v1201_v32, %v2947_v61  ;;  %v2590_v36 = vpop.f32.mrb[11].mxu1 }
 0x8f7   : > { %v1207_v37 = vadd.f32 %v1206_v33, %v1205_v34 }
 0x8f8   : > { %v1382_v44 = vpop.f32.mrb[12].mxu1 }
 0x8f9   : > { %v1208_v38 = vsel %vm701_vm7, %v1207_v37, 0.0  ;;  %v2608_v23 = vpop.f32.mrb[13].mxu1 }
 0x8fa   : > { %1209 = vadd.xlane.f32.xlu0 %v1208_v38 }
 0x8fc   : > { %v1455_v24 = vpop.f32.mrb[14].mxu1 }
 0x8fd   : > { %v2615_v27 = vpop.f32.mrb[15].mxu1  ;;  %v1456_v28 = vadd.f32 %v2892_v8, %v1455_v24 }
 0x8ff   : > { %v1607_v30 = vmul.f32 %v1456_v28, %v2918_v25 }
 0x987   : > { %v1210_v39 = vpop.xlane.xlu0 %1209 }
 0x988   : > { %v1211_v40 = vadd.f32 %v1210_v39, %v2925_v35 }
 0x98a   : > { %v2417_v41 = vmul.f32 -1.442695, %v1211_v40 }
 0x98c   : > { %2774 = vpow2.f32 %v2417_v41 }
 0x996   : > { %v2775_v42 = vpop.eup %2774 }
 0x997   : > { %v1215_v43 = vadd.f32 1.0, %v2775_v42 }
 0x999   : > { %2776 = vrcp.f32 %v1215_v43 }
 0x9a3   : > { %v2777_v45 = vpop.eup %2776 }
 0x9a4   : > { %1220 = vperm.xlu1 %2760, %v2777_v45  }
 0xa23   : > { %v1221_v46 = vpop.permute.xlu1 %1220 }
 0xa24   : > { %v1223_v47 = vmul.f32 %v1221_v46, %v1201_v32 }
 0xa26   : > { %v1224_v48 = vadd.f32 %v1223_v47, %v878_v31 }
 0xa28   : > { %v1225_v49 = vsel %vm701_vm7, %v1224_v48, 0.0 }
 0xa29   : > { %v1226_v50 = vrot.slane %v1225_v49, 4 }
 0xa2b   : > { %v1227_v51 = vadd.f32 %v1226_v50, %v1225_v49 }
 0xa2d   : > { %v1228_v52 = vrot.slane %v1227_v51, 2 }
 0xa2f   : > { %v1229_v53 = vadd.f32 %v1228_v52, %v1227_v51 }
 0xa31   : > { %v1230_v54 = vrot.slane %v1229_v53, 1 }
 0xa33   : > { %v1231_v55 = vadd.f32 %v1230_v54, %v1229_v53 }
 0xa35   : > { %v1232_v57 = vmul.f32 0.125, %v1231_v55 }
 0xa37   : > { %v1233_v58 = vsub.f32 %v1224_v48, %v1232_v57 }
 0xa39   : > { %v1234_v59 = vadd.f32 %v1233_v58, %v2899_v11  ;;  %v1383_v58 = vadd.f32 %v2892_v8, %v1382_v44 }
 0xa3b   : > { %v1235_v62 = vadd.f32 %v1234_v59, %v1232_v57 }
 0xa3d   : > { %v1237_v0 = vrot.slane %v1235_v62, 7  ;;  %v1711_v62 = vmul.f32 %v1383_v58, %v2945_v60 }
 0xa3f   : > { %2600 = vmatmul.mubr.msk.f32.vlgmr.msra.gmra.mrb[10].mxu0 %vm701_vm7, %v1237_v0 }
 0xa40   : > { %2724 = vmatpush3.bf16.msra.mxu0 %v2857_v3  ;;  %2620 = vmatprep.mubr.msk.f32.mxu0 %vm2803_vm0, %v2804_v4 }
 0xa41   : > { %2628 = vmatprep.subr.mxu0 %v2804_v4 }
 0xa43   : > { %2621 = vmatmul.mubr.msk.f32.vlgmr.msra.gmra.mrb[12].mxu0 %vm268_vm1, %v1459_v1 }
 0xa44   : > { %2630 = vmatprep.mubr.msk.f32.mxu0 %vm2803_vm0, %v2804_v4 }
 0xb12   : > { %v1306_v10 = vpop.f32.mrb[10].mxu0 }
 0xb13   : > { %v1307_v9 = vadd.f32 %v1306_v10, %v3051_v6  ;;  %v2601_v12 = vpop.f32.mrb[11].mxu0 }
 0xb15   : > { %v2321_v14 = vrot.slane %v1307_v9, 7 }
 0xb16   : > { %v1528_v15 = vpop.f32.mrb[12].mxu0 }
 0xb17   : > { %v3056_v16 = vsel %vm2329_vm8, %v802_v13, %v2321_v14  ;;  %v1529_v18 = vadd.f32 %v2892_v8, %v1528_v15  ;;  %v2622_v20 = vpop.f32.mrb[13].mxu0 }
 0xb19   : > { %v1532_v21 = vadd.f32 %v1529_v18, %v2899_v11 }
 0xb1b   : > { %2624 = vmatpush3.msk.msra.mxu1 %vm493_vm2, %v1532_v21 }
 0xb1c   : > { %2626 = vmatmul.mubr.msk.f32.vlgmr.msra.gmra.mrb[16].mxu1 %vm489_vm3, %v2906_v17  ;;  %2725 = vmatprep.subr.bf16.mxu1 %v2802_v2 }
 0xb1d   : > { %2727 = vmatpush3.bf16.msra.mxu1 %v2960_v19  ;;  %2641 = vmatprep.mubr.msk.f32.mxu1 %vm2803_vm0, %v2804_v4 }
 0xb1e   : > { %2728 = vmatprep.subr.bf16.mxu1 %v2802_v2 }
 0xb21   : > { %2730 = vmatpush3.bf16.msra.mxu1 %v2970_v22 }
 0xb22   : > { %2737 = vmatprep.subr.bf16.mxu1 %v2802_v2 }
 0xbef   : > { %v1602_v29 = vpop.f32.mrb[16].mxu1 }
 0xbf0   : > { %v1606_v31 = vmul.f32 %v1602_v29, %v2920_v26  ;;  %v2627_v32 = vpop.f32.mrb[17].mxu1 }
 0xbf2   : > { %v1608_v33 = vadd.f32 %v1607_v30, %v1606_v31 }
 0xbf4   : > { %v1609_v34 = vsel %vm578_vm4, %v1608_v33, 0.0 }
 0xbf5   : > { %1610 = vadd.xlane.f32.xlu1 %v1609_v34 }
 0xc82   : > { %v1611_v36 = vpop.xlane.xlu1 %1610 }
 0xc83   : > { %v1612_v37 = vadd.f32 %v1611_v36, %v2925_v35  ;;  %v2432_v36 = vld [vmem:[%s2874_s30 + $0x38] sm:$0x3f] }
 0xc85   : > { %v2426_v38 = vmul.f32 -1.442695, %v1612_v37 }
 0xc87   : > { %2778 = vpow2.f32 %v2426_v38  ;;  %v1964_v38 = vrot.slane %v2432_v36, 4 }
 0xc91   : > { %v2779_v39 = vpop.eup %2778 }
 0xc92   : > { %v1616_v40 = vadd.f32 1.0, %v2779_v39  ;;  %v2431_v39 = vld [vmem:[%s2874_s30 + $0x30] sm:$0xff] }
 0xc94   : > { %2780 = vrcp.f32 %v1616_v40 }
 0xc9e   : > { %v2781_v41 = vpop.eup %2780 }
 0xc9f   : > { %1621 = vperm.xlu0 %2759, %v2781_v41  }
 0xd1e   : > { %v1622_v42 = vpop.permute.xlu0 %1621 }
 0xd1f   : > { %v1624_v43 = vmul.f32 %v1622_v42, %v1602_v29 }
 0xd21   : > { %v1625_v45 = vadd.f32 %v1624_v43, %v1456_v28 }
 0xd23   : > { %v1626_v46 = vsel %vm578_vm4, %v1625_v45, 0.0 }
 0xd24   : > { %v1627_v47 = vrot.slane %v1626_v46, 4 }
 0xd26   : > { %v1628_v48 = vadd.f32 %v1627_v47, %v1626_v46 }
 0xd28   : > { %v1629_v49 = vrot.slane %v1628_v48, 2 }
 0xd2a   : > { %v1630_v50 = vadd.f32 %v1629_v49, %v1628_v48 }
 0xd2c   : > { %v1631_v51 = vrot.slane %v1630_v50, 1 }
 0xd2e   : > { %v1632_v52 = vadd.f32 %v1631_v51, %v1630_v50 }
 0xd30   : > { %v1633_v53 = vmul.f32 0.25, %v1632_v52 }
 0xd32   : > { %v1634_v54 = vsub.f32 %v1625_v45, %v1633_v53 }
 0xd34   : > { %v1635_v55 = vadd.f32 %v1634_v54, %v2899_v11 }
 0xd36   : > { %v1636_v57 = vadd.f32 %v1635_v55, %v1633_v53 }
 0xd38   : > { %2629 = vmatpush3.msk.msra.mxu0 %vm616_vm5, %v1636_v57 }
 0xd39   : > { %2631 = vmatmul.mubr.msk.f32.vlgmr.msra.gmra.mrb[14].mxu0 %vm612_vm6, %v2933_v56  ;;  %2731 = vmatprep.subr.bf16.mxu0 %v2802_v2 }
 0xd3a   : > { %2733 = vmatpush3.bf16.msra.mxu0 %v2857_v3  ;;  %2648 = vmatprep.mubr.msk.f32.mxu0 %vm2803_vm0, %v2804_v4 }
 0xd3b   : > { %2734 = vmatprep.subr.bf16.mxu0 %v2802_v2 }
 0xd3d   : > { %2649 = vmatmul.mubr.msk.f32.vlgmr.msra.gmra.mrb[16].mxu0 %vm268_vm1, %v2431_v39 }
 0xd3e   : > { %2736 = vmatpush3.bf16.msra.mxu0 %v2857_v3  ;;  %2655 = vmatprep.mubr.msk.f32.mxu0 %vm2803_vm0, %v2804_v4 }
 0xd3f   : > { %2665 = vmatprep.subr.mxu0 %v2804_v4 }
 0xd41   : > { %2656 = vmatmul.mubr.msk.f32.vlgmr.msra.gmra.mrb[18].mxu0 %vm268_vm1, %v2432_v36 }
 0xd42   : > { %2667 = vmatprep.mubr.msk.f32.mxu0 %vm2803_vm0, %v2804_v4 }
 0xe0c   : > { %v1706_v59 = vpop.f32.mrb[14].mxu0 }
 0xe0d   : > { %v1710_v63 = vmul.f32 %v1706_v59, %v2947_v61  ;;  %v2632_v0 = vpop.f32.mrb[15].mxu0 }
 0xe0f   : > { %v1712_v1 = vadd.f32 %v1711_v62, %v1710_v63 }
 0xe11   : > { %v1713_v5 = vsel %vm701_vm7, %v1712_v1, 0.0 }
 0xe12   : > { %1714 = vadd.xlane.f32.xlu0 %v1713_v5 }
 0xe9f   : > { %v1715_v10 = vpop.xlane.xlu0 %1714 }
 0xea0   : > { %v1716_v9 = vadd.f32 %v1715_v10, %v2925_v35 }
 0xea2   : > { %v2429_v12 = vmul.f32 -1.442695, %v1716_v9 }
 0xea4   : > { %2782 = vpow2.f32 %v2429_v12 }
 0xeae   : > { %v2783_v13 = vpop.eup %2782 }
 0xeaf   : > { %v1720_v14 = vadd.f32 1.0, %v2783_v13 }
 0xeb1   : > { %2784 = vrcp.f32 %v1720_v14 }
 0xebb   : > { %v2785_v15 = vpop.eup %2784 }
 0xebc   : > { %1725 = vperm.xlu1 %2760, %v2785_v15  }
 0xf3b   : > { %v1726_v18 = vpop.permute.xlu1 %1725 }
 0xf3c   : > { %v1728_v20 = vmul.f32 %v1726_v18, %v1706_v59 }
 0xf3e   : > { %v1729_v21 = vadd.f32 %v1728_v20, %v1383_v58 }
 0xf40   : > { %v1730_v44 = vsel %vm701_vm7, %v1729_v21, 0.0 }
 0xf41   : > { %v1731_v23 = vrot.slane %v1730_v44, 4 }
 0xf43   : > { %v1732_v24 = vadd.f32 %v1731_v23, %v1730_v44 }
 0xf45   : > { %v1733_v27 = vrot.slane %v1732_v24, 2 }
 0xf47   : > { %v1734_v28 = vadd.f32 %v1733_v27, %v1732_v24 }
 0xf49   : > { %v1735_v29 = vrot.slane %v1734_v28, 1 }
 0xf4b   : > { %v1736_v30 = vadd.f32 %v1735_v29, %v1734_v28 }
 0xf4d   : > { %v1737_v31 = vmul.f32 0.125, %v1736_v30 }
 0xf4f   : > { %v1738_v32 = vsub.f32 %v1729_v21, %v1737_v31 }
 0xf51   : > { %v1739_v33 = vadd.f32 %v1738_v32, %v2899_v11 }
 0xf53   : > { %v1740_v34 = vadd.f32 %v1739_v33, %v1737_v31 }
 0xf55   : > { %v1742_v37 = vrot.slane %v1740_v34, 7 }
 0xf57   : > { %2642 = vmatmul.mubr.msk.f32.vlgmr.msra.gmra.mrb[18].mxu1 %vm701_vm7, %v1742_v37 }
 0xf58   : > { %2739 = vmatpush3.bf16.msra.mxu1 %v2857_v3  ;;  %2662 = vmatprep.mubr.msk.f32.mxu1 %vm2803_vm0, %v2804_v4 }
 0xf59   : > { %2670 = vmatprep.subr.mxu1 %v2804_v4 }
 0xf5b   : > { %2663 = vmatmul.mubr.msk.f32.vlgmr.msra.gmra.mrb[20].mxu1 %vm268_vm1, %v1964_v38 }
 0xf5c   : > { %2672 = vmatprep.mubr.msk.f32.mxu1 %vm2803_vm0, %v2804_v4 }
0x102a   : > { %v1811_v40 = vpop.f32.mrb[18].mxu1 }
0x102b   : > { %v1812_v41 = vadd.f32 %v1811_v40, %v3051_v6  ;;  %v2643_v42 = vpop.f32.mrb[19].mxu1 }
0x102d   : > { %v2324_v43 = vrot.slane %v1812_v41, 6 }
0x102e   : > { %v2033_v45 = vpop.f32.mrb[20].mxu1 }
0x102f   : > { %v3113_v46 = vsel %vm493_vm2, %v3056_v16, %v2324_v43  ;;  %v2034_v3 = vadd.f32 %v2892_v8, %v2033_v45  ;;  %v2664_v47 = vpop.f32.mrb[21].mxu1  ;;  %v1887_v16 = vpop.f32.mrb[16].mxu0 }
0x1030   : > { %v2650_v49 = vpop.f32.mrb[17].mxu0 }
0x1031   : > { %v2037_v48 = vadd.f32 %v2034_v3, %v2899_v11  ;;  %v1960_v50 = vpop.f32.mrb[18].mxu0 }
0x1032   : > { %v2657_v51 = vpop.f32.mrb[19].mxu0  ;;  %v1961_v52 = vadd.f32 %v2892_v8, %v1960_v50 }
0x1033   : > { %2666 = vmatpush3.msk.msra.mxu0 %vm493_vm2, %v2037_v48 }
0x1034   : > { %2668 = vmatmul.mubr.msk.f32.vlgmr.msra.gmra.mrb[20].mxu0 %vm489_vm3, %v2906_v17  ;;  %2740 = vmatprep.subr.bf16.mxu0 %v2802_v2  ;;  %v2112_v17 = vmul.f32 %v1961_v52, %v2918_v25 }
0x1035   : > { %2742 = vmatpush3.bf16.msra.mxu0 %v2960_v19  ;;  %2683 = vmatprep.mubr.msk.f32.mxu0 %vm2803_vm0, %v2804_v4 }
0x1036   : > { %2743 = vmatprep.subr.bf16.mxu0 %v2802_v2 }
0x1039   : > { %2745 = vmatpush3.bf16.msra.mxu0 %v2970_v22 }
0x1107   : > { %v2107_v53 = vpop.f32.mrb[20].mxu0 }
0x1108   : > { %v2111_v54 = vmul.f32 %v2107_v53, %v2920_v26  ;;  %v2669_v55 = vpop.f32.mrb[21].mxu0 }
0x110a   : > { %v2113_v19 = vadd.f32 %v2112_v17, %v2111_v54 }
0x110c   : > { %v2114_v57 = vsel %vm578_vm4, %v2113_v19, 0.0 }
0x110d   : > { %2115 = vadd.xlane.f32.xlu1 %v2114_v57 }
0x119a   : > { %v2116_v4 = vpop.xlane.xlu1 %2115 }
0x119b   : > { %v2117_v2 = vadd.f32 %v2116_v4, %v2925_v35 }
0x119d   : > { %v2438_v22 = vmul.f32 -1.442695, %v2117_v2 }
0x119f   : > { %2786 = vpow2.f32 %v2438_v22 }
0x11a9   : > { %v2787_v58 = vpop.eup %2786 }
0x11aa   : > { %v2121_v59 = vadd.f32 1.0, %v2787_v58 }
0x11ac   : > { %2788 = vrcp.f32 %v2121_v59 }
0x11b6   : > { %v2789_v62 = vpop.eup %2788 }
0x11b7   : > { %2126 = vperm.xlu0 %2759, %v2789_v62  }
0x11bb   : > { %2761 = vset.pattern.permute.xlu0 %v2806_v7  ;;  %v1888_v7 = vadd.f32 %v2892_v8, %v1887_v16 }
0x11bd   : > { %v2216_v44 = vmul.f32 %v1888_v7, %v2945_v60 }
0x1236   : > { %v2127_v25 = vpop.permute.xlu0 %2126 }
0x1237   : > { %v2129_v63 = vmul.f32 %v2127_v25, %v2107_v53 }
0x1239   : > { %v2130_v26 = vadd.f32 %v2129_v63, %v1961_v52 }
0x123b   : > { %v2131_v0 = vsel %vm578_vm4, %v2130_v26, 0.0 }
0x123c   : > { %v2132_v1 = vrot.slane %v2131_v0, 4 }
0x123e   : > { %v2133_v5 = vadd.f32 %v2132_v1, %v2131_v0 }
0x1240   : > { %v2134_v10 = vrot.slane %v2133_v5, 2 }
0x1242   : > { %v2135_v9 = vadd.f32 %v2134_v10, %v2133_v5 }
0x1244   : > { %v2136_v12 = vrot.slane %v2135_v9, 1 }
0x1246   : > { %v2137_v13 = vadd.f32 %v2136_v12, %v2135_v9 }
0x1248   : > { %v2138_v14 = vmul.f32 0.25, %v2137_v13 }
0x124a   : > { %v2139_v15 = vsub.f32 %v2130_v26, %v2138_v14 }
0x124c   : > { %v2140_v18 = vadd.f32 %v2139_v15, %v2899_v11 }
0x124e   : > { %v2141_v20 = vadd.f32 %v2140_v18, %v2138_v14 }
0x1250   : > { %2671 = vmatpush3.msk.msra.mxu1 %vm616_vm5, %v2141_v20 }
0x1251   : > { %2673 = vmatmul.mubr.msk.f32.vlgmr.msra.gmra.mrb[22].mxu1 %vm612_vm6, %v2933_v56 }
0x1324   : > { %v2211_v21 = vpop.f32.mrb[22].mxu1 }
0x1325   : > { %v2215_v23 = vmul.f32 %v2211_v21, %v2947_v61  ;;  %v2674_v24 = vpop.f32.mrb[23].mxu1 }
0x1327   : > { %v2217_v27 = vadd.f32 %v2216_v44, %v2215_v23 }
0x1329   : > { %v2218_v28 = vsel %vm701_vm7, %v2217_v27, 0.0 }
0x132a   : > { %2219 = vadd.xlane.f32.xlu0 %v2218_v28 }
0x13b7   : > { %v2220_v29 = vpop.xlane.xlu0 %2219 }
0x13b8   : > { %v2221_v30 = vadd.f32 %v2220_v29, %v2925_v35 }
0x13ba   : > { %v2441_v31 = vmul.f32 -1.442695, %v2221_v30 }
0x13bc   : > { %2790 = vpow2.f32 %v2441_v31 }
0x13c6   : > { %v2791_v32 = vpop.eup %2790 }
0x13c7   : > { %v2225_v33 = vadd.f32 1.0, %v2791_v32 }
0x13c9   : > { %2792 = vrcp.f32 %v2225_v33 }
0x13d3   : > { %v2793_v56 = vpop.eup %2792 }
0x13d4   : > { %2230 = vperm.xlu1 %2760, %v2793_v56  }
0x1453   : > { %v2231_v8 = vpop.permute.xlu1 %2230 }
0x1454   : > { %v2233_v60 = vmul.f32 %v2231_v8, %v2211_v21 }
0x1456   : > { %v2234_v34 = vadd.f32 %v2233_v60, %v1888_v7 }
0x1458   : > { %v2235_v61 = vsel %vm701_vm7, %v2234_v34, 0.0 }
0x1459   : > { %v2236_v36 = vrot.slane %v2235_v61, 4 }
0x145b   : > { %v2237_v37 = vadd.f32 %v2236_v36, %v2235_v61 }
0x145d   : > { %v2238_v38 = vrot.slane %v2237_v37, 2 }
0x145f   : > { %v2239_v39 = vadd.f32 %v2238_v38, %v2237_v37 }
0x1461   : > { %v2240_v40 = vrot.slane %v2239_v39, 1 }
0x1463   : > { %v2241_v41 = vadd.f32 %v2240_v40, %v2239_v39 }
0x1465   : > { %v2242_v35 = vmul.f32 0.125, %v2241_v41 }
0x1467   : > { %v2243_v42 = vsub.f32 %v2234_v34, %v2242_v35 }
0x1469   : > { %v2244_v43 = vadd.f32 %v2243_v42, %v2899_v11 }
0x146b   : > { %v2245_v45 = vadd.f32 %v2244_v43, %v2242_v35 }
0x146d   : > { %v2247_v3 = vrot.slane %v2245_v45, 7 }
0x146f   : > { %2684 = vmatmul.mubr.msk.f32.vlgmr.msra.gmra.mrb[22].mxu0 %vm701_vm7, %v2247_v3 }
0x1542   : > { %v2316_v47 = vpop.f32.mrb[22].mxu0 }
0x1543   : > { %v2317_v48 = vadd.f32 %v2316_v47, %v3051_v6  ;;  %v2685_v16 = vpop.f32.mrb[23].mxu0 }
0x1545   : > { %v2327_v49 = vrot.slane %v2317_v48, 5 }
0x1547   : > { %v2333_v50 = vsel %vm2332_vm9, %v3113_v46, %v2327_v49 }
0x1548   : > { %2334 = vst.msk [vmem:[%s249_s8] sm:$0xf] %vm578_vm4, %v2333_v50 }
0x1549 PF: > { %s16_s21 = sadd.s32 1, %s2800_s21  }
0x154a   : > { %p13_p4 = scmp.ge.s32.totalorder %s16_s21, 4  }
0x154c   :  { %15 = sbr.rel (!%p13_p4) target bundleno = 1 (0x1), region = 77 }

</bundles_post_ra>
